<compile_context>
chip_gen: v7x
topology: tpu7x:2x2x1
jax: 0.10.0
libtpu: 0.0.40
codegen_flags: <defaults>
</compile_context>

<pallas_src>
import jax
import jax.numpy as jnp
import numpy as np
from jax import lax
from jax.experimental import pallas as pl
from jax.experimental.pallas import tpu as pltpu

E_PAD = 128  # pad fc output to a full lane-width so the single store is dense


def simple_gru_kernel(x_ref, wih_ref, whh_ref, bi_ref, bhn_ref,
                      wfc_ref, bfc_ref, out_ref, hs_ref):
    """Whole forward pass in one kernel invocation (no grid).

    x_ref   : (B, D)
    wih_ref : (D, 3H)  gate order [r, z, n]     whh_ref : (H, 3H)
    bi_ref  : (1, 3H)  r/z entries are (b_ih + b_hh); n entry is b_ih only
    bhn_ref : (1, H)   n-gate hidden bias (inside the r*(...) term)
    wfc_ref : (H, E_PAD)                        bfc_ref : (1, E_PAD)
    out_ref : (T*B, E_PAD)                      hs_ref  : (T*B, H) f32 scratch
    """
    TB, H = hs_ref.shape
    B = x_ref.shape[0]
    T = TB // B

    x = x_ref[...].astype(jnp.float32)

    # One-time input projection (x is identical at every timestep).
    gi = jnp.dot(x, wih_ref[...], preferred_element_type=jnp.float32) + bi_ref[...]
    gi_r = gi[:, :H]
    gi_z = gi[:, H:2 * H]
    gi_n = gi[:, 2 * H:]

    # Load recurrent weights once and gate-split them OFF the critical path;
    # the split values stay vreg/VMEM resident across the whole recurrence.
    whh = whh_ref[...]
    whh_r = whh[:, :H]
    whh_z = whh[:, H:2 * H]
    whh_n = whh[:, 2 * H:]
    b_hn = bhn_ref[...]

    # Fully-unrolled recurrence; h is carried as a value (register-resident).
    # Each h_t is stashed to VMEM with a static slice, off the serial chain.
    h = jnp.zeros((B, H), jnp.float32)
    for t in range(T):
        gh_r = jnp.dot(h, whh_r, preferred_element_type=jnp.float32)
        gh_z = jnp.dot(h, whh_z, preferred_element_type=jnp.float32)
        gh_n = jnp.dot(h, whh_n, preferred_element_type=jnp.float32) + b_hn
        r = jax.nn.sigmoid(gi_r + gh_r)
        z = jax.nn.sigmoid(gi_z + gh_z)
        n = jnp.tanh(gi_n + r * gh_n)
        h = (1.0 - z) * n + z * h
        hs_ref[t * B:(t + 1) * B, :] = h

    # Hoisted output projection: one matmul + sigmoid + one lane-dense store.
    hs = hs_ref[...]
    logits = jnp.dot(hs, wfc_ref[...], preferred_element_type=jnp.float32) + bfc_ref[...]
    out_ref[...] = jax.nn.sigmoid(logits).astype(out_ref.dtype)


def simple_gru_forward(x, params, output_size):
    """x: (B, input_size) -> (B, output_size, num_events), matching SimpleGRU."""
    wih, whh, bih, bhh, wfc, bfc = params
    B, _ = x.shape
    H = whh.shape[0]
    E = wfc.shape[1]
    T = output_size

    # Fold r/z biases (both added pre-activation); keep the n-gate hidden bias
    # separate because PyTorch applies it inside the r*(...) term.
    bi = jnp.concatenate(
        [bih[:, :H] + bhh[:, :H],
         bih[:, H:2 * H] + bhh[:, H:2 * H],
         bih[:, 2 * H:]], axis=1)
    b_hn = bhh[:, 2 * H:]

    # Pad fc output dim to 128 lanes so the kernel's single store is dense.
    wfc_p = jnp.zeros((H, E_PAD), jnp.float32).at[:, :E].set(wfc)
    bfc_p = jnp.zeros((1, E_PAD), jnp.float32).at[:, :E].set(bfc)

    vmem = pl.BlockSpec(memory_space=pltpu.MemorySpace.VMEM)
    out_pad = pl.pallas_call(
        simple_gru_kernel,
        out_shape=jax.ShapeDtypeStruct((T * B, E_PAD), jnp.float32),
        in_specs=[vmem] * 7,
        out_specs=vmem,
        scratch_shapes=[pltpu.VMEM((T * B, H), jnp.float32)],
    )(x, wih, whh, bi, b_hn, wfc_p, bfc_p)

    out = out_pad[:, :E].reshape(T, B, E)      # row t*B+b -> (t, b)
    return jnp.transpose(out, (1, 0, 2))       # (B, T, E), batch_first


def reference_forward(x, params, output_size):
    """Pure-JAX reference of the PyTorch forward (eval mode)."""
    wih, whh, bih, bhh, wfc, bfc = params
    H = whh.shape[0]
    gi = x @ wih + bih  # same every timestep

    def step(h, _):
        gh = h @ whh + bhh
        r = jax.nn.sigmoid(gi[:, :H] + gh[:, :H])
        z = jax.nn.sigmoid(gi[:, H:2 * H] + gh[:, H:2 * H])
        n = jnp.tanh(gi[:, 2 * H:] + r * gh[:, 2 * H:])
        h_new = (1.0 - z) * n + z * h
        return h_new, h_new

    h0 = jnp.zeros((x.shape[0], H), jnp.float32)
    _, hs = lax.scan(step, h0, None, length=output_size)  # (T, B, H)
    out = jax.nn.sigmoid(hs @ wfc + bfc)                  # (T, B, E)
    return jnp.transpose(out, (1, 0, 2))


def init_params(key, input_size, hidden_size, num_events):
    """Deterministic init mirroring PyTorch's uniform(-1/sqrt(H), 1/sqrt(H))."""
    k = 1.0 / np.sqrt(hidden_size)
    ks = jax.random.split(key, 6)
    u = lambda kk, shape: jax.random.uniform(kk, shape, jnp.float32, -k, k)
    wih = u(ks[0], (input_size, 3 * hidden_size))
    whh = u(ks[1], (hidden_size, 3 * hidden_size))
    bih = u(ks[2], (1, 3 * hidden_size))
    bhh = u(ks[3], (1, 3 * hidden_size))
    wfc = u(ks[4], (hidden_size, num_events))
    bfc = u(ks[5], (1, num_events))
    return (wih, whh, bih, bhh, wfc, bfc)


if __name__ == "__main__":
    input_size = 8
    hidden_size = 32
    output_size = 16   # == sequence length T after the repeat()
    num_events = 4
    batch = 2

    key = jax.random.PRNGKey(0)
    kx, kp = jax.random.split(key)
    x = jax.random.normal(kx, (batch, input_size), jnp.float32)
    params = init_params(kp, input_size, hidden_size, num_events)

    out = simple_gru_forward(x, params, output_size)
    out = jax.block_until_ready(out)

    ref = jax.block_until_ready(reference_forward(x, params, output_size))
    assert out.shape == (batch, output_size, num_events), out.shape
    np.testing.assert_allclose(np.asarray(out), np.asarray(ref),
                               rtol=1e-5, atol=1e-5)
    print("KERNEL_OK")
</pallas_src>

<mosaic_0001>
module attributes {stable_mosaic.version = 11 : i64} {
  func.func @simple_gru_kernel(%arg0: memref<2x8xf32, #tpu.memory_space<vmem>>, %arg1: memref<8x96xf32, #tpu.memory_space<vmem>>, %arg2: memref<32x96xf32, #tpu.memory_space<vmem>>, %arg3: memref<1x96xf32, #tpu.memory_space<vmem>>, %arg4: memref<1x32xf32, #tpu.memory_space<vmem>>, %arg5: memref<32x128xf32, #tpu.memory_space<vmem>>, %arg6: memref<1x128xf32, #tpu.memory_space<vmem>>, %arg7: memref<32x128xf32, #tpu.memory_space<vmem>>, %arg8: memref<32x32xf32, #tpu.memory_space<vmem>>) attributes {dimension_semantics = [], scalar_prefetch = 0 : i64, scratch_operands = 1 : i64, tpu.core_type = #tpu.core_type<tc>} {
    %c0 = arith.constant 0 : index
    %c0_0 = arith.constant 0 : index
    %0 = vector.load %arg0[%c0, %c0_0] : memref<2x8xf32, #tpu.memory_space<vmem>>, vector<2x8xf32>
    %c0_1 = arith.constant 0 : index
    %c0_2 = arith.constant 0 : index
    %1 = vector.load %arg1[%c0_1, %c0_2] : memref<8x96xf32, #tpu.memory_space<vmem>>, vector<8x96xf32>
    %cst = arith.constant dense<0.000000e+00> : vector<2x96xf32>
    %2 = tpu.matmul %0, %1, %cst {dimension_numbers = #tpu.dot_dimension_numbers<[1], [0], [0], [1], [0, 0, 1, 1], [], []>} : vector<2x8xf32>, vector<8x96xf32>, vector<2x96xf32> -> vector<2x96xf32>
    %c0_3 = arith.constant 0 : index
    %c0_4 = arith.constant 0 : index
    %3 = vector.load %arg3[%c0_3, %c0_4] : memref<1x96xf32, #tpu.memory_space<vmem>>, vector<1x96xf32>
    %4 = vector.broadcast %3 : vector<1x96xf32> to vector<2x96xf32>
    %5 = arith.addf %2, %4 : vector<2x96xf32>
    %6 = vector.extract_strided_slice %5 {offsets = [0, 0], sizes = [2, 32], strides = [1, 1]} : vector<2x96xf32> to vector<2x32xf32>
    %7 = vector.extract_strided_slice %5 {offsets = [0, 32], sizes = [2, 32], strides = [1, 1]} : vector<2x96xf32> to vector<2x32xf32>
    %8 = vector.extract_strided_slice %5 {offsets = [0, 64], sizes = [2, 32], strides = [1, 1]} : vector<2x96xf32> to vector<2x32xf32>
    %c0_5 = arith.constant 0 : index
    %c0_6 = arith.constant 0 : index
    %9 = vector.load %arg2[%c0_5, %c0_6] : memref<32x96xf32, #tpu.memory_space<vmem>>, vector<32x96xf32>
    %10 = vector.extract_strided_slice %9 {offsets = [0, 0], sizes = [32, 32], strides = [1, 1]} : vector<32x96xf32> to vector<32x32xf32>
    %11 = vector.extract_strided_slice %9 {offsets = [0, 32], sizes = [32, 32], strides = [1, 1]} : vector<32x96xf32> to vector<32x32xf32>
    %12 = vector.extract_strided_slice %9 {offsets = [0, 64], sizes = [32, 32], strides = [1, 1]} : vector<32x96xf32> to vector<32x32xf32>
    %c0_7 = arith.constant 0 : index
    %c0_8 = arith.constant 0 : index
    %13 = vector.load %arg4[%c0_7, %c0_8] : memref<1x32xf32, #tpu.memory_space<vmem>>, vector<1x32xf32>
    %cst_9 = arith.constant 0.000000e+00 : f32
    %14 = vector.broadcast %cst_9 : f32 to vector<2x32xf32>
    %cst_10 = arith.constant dense<0.000000e+00> : vector<2x32xf32>
    %15 = tpu.matmul %14, %10, %cst_10 {dimension_numbers = #tpu.dot_dimension_numbers<[1], [0], [0], [1], [0, 0, 1, 1], [], []>} : vector<2x32xf32>, vector<32x32xf32>, vector<2x32xf32> -> vector<2x32xf32>
    %cst_11 = arith.constant dense<0.000000e+00> : vector<2x32xf32>
    %16 = tpu.matmul %14, %11, %cst_11 {dimension_numbers = #tpu.dot_dimension_numbers<[1], [0], [0], [1], [0, 0, 1, 1], [], []>} : vector<2x32xf32>, vector<32x32xf32>, vector<2x32xf32> -> vector<2x32xf32>
    %cst_12 = arith.constant dense<0.000000e+00> : vector<2x32xf32>
    %17 = tpu.matmul %14, %12, %cst_12 {dimension_numbers = #tpu.dot_dimension_numbers<[1], [0], [0], [1], [0, 0, 1, 1], [], []>} : vector<2x32xf32>, vector<32x32xf32>, vector<2x32xf32> -> vector<2x32xf32>
    %18 = vector.broadcast %13 : vector<1x32xf32> to vector<2x32xf32>
    %19 = arith.addf %17, %18 : vector<2x32xf32>
    %20 = arith.addf %6, %15 : vector<2x32xf32>
    %21 = arith.negf %20 : vector<2x32xf32>
    %22 = math.exp %21 : vector<2x32xf32>
    %cst_13 = arith.constant 1.000000e+00 : f32
    %23 = vector.broadcast %cst_13 : f32 to vector<2x32xf32>
    %24 = arith.addf %23, %22 : vector<2x32xf32>
    %25 = arith.divf %23, %24 : vector<2x32xf32>
    %26 = arith.addf %7, %16 : vector<2x32xf32>
    %27 = arith.negf %26 : vector<2x32xf32>
    %28 = math.exp %27 : vector<2x32xf32>
    %cst_14 = arith.constant 1.000000e+00 : f32
    %29 = vector.broadcast %cst_14 : f32 to vector<2x32xf32>
    %30 = arith.addf %29, %28 : vector<2x32xf32>
    %31 = arith.divf %29, %30 : vector<2x32xf32>
    %32 = arith.mulf %25, %19 : vector<2x32xf32>
    %33 = arith.addf %8, %32 : vector<2x32xf32>
    %34 = math.tanh %33 : vector<2x32xf32>
    %cst_15 = arith.constant 1.000000e+00 : f32
    %35 = vector.broadcast %cst_15 : f32 to vector<2x32xf32>
    %36 = arith.subf %35, %31 : vector<2x32xf32>
    %37 = arith.mulf %36, %34 : vector<2x32xf32>
    %38 = arith.mulf %31, %14 : vector<2x32xf32>
    %39 = arith.addf %37, %38 : vector<2x32xf32>
    %c0_16 = arith.constant 0 : index
    %c0_17 = arith.constant 0 : index
    %40 = vector.load %arg8[%c0_16, %c0_17] : memref<32x32xf32, #tpu.memory_space<vmem>>, vector<2x32xf32>
    tpu.vector_store %arg8[%c0_16, %c0_17], %39 {strides = array<i32>} : memref<32x32xf32, #tpu.memory_space<vmem>>, vector<2x32xf32>,
    %cst_18 = arith.constant dense<0.000000e+00> : vector<2x32xf32>
    %41 = tpu.matmul %39, %10, %cst_18 {dimension_numbers = #tpu.dot_dimension_numbers<[1], [0], [0], [1], [0, 0, 1, 1], [], []>} : vector<2x32xf32>, vector<32x32xf32>, vector<2x32xf32> -> vector<2x32xf32>
    %cst_19 = arith.constant dense<0.000000e+00> : vector<2x32xf32>
    %42 = tpu.matmul %39, %11, %cst_19 {dimension_numbers = #tpu.dot_dimension_numbers<[1], [0], [0], [1], [0, 0, 1, 1], [], []>} : vector<2x32xf32>, vector<32x32xf32>, vector<2x32xf32> -> vector<2x32xf32>
    %cst_20 = arith.constant dense<0.000000e+00> : vector<2x32xf32>
    %43 = tpu.matmul %39, %12, %cst_20 {dimension_numbers = #tpu.dot_dimension_numbers<[1], [0], [0], [1], [0, 0, 1, 1], [], []>} : vector<2x32xf32>, vector<32x32xf32>, vector<2x32xf32> -> vector<2x32xf32>
    %44 = vector.broadcast %13 : vector<1x32xf32> to vector<2x32xf32>
    %45 = arith.addf %43, %44 : vector<2x32xf32>
    %46 = arith.addf %6, %41 : vector<2x32xf32>
    %47 = arith.negf %46 : vector<2x32xf32>
    %48 = math.exp %47 : vector<2x32xf32>
    %cst_21 = arith.constant 1.000000e+00 : f32
    %49 = vector.broadcast %cst_21 : f32 to vector<2x32xf32>
    %50 = arith.addf %49, %48 : vector<2x32xf32>
    %51 = arith.divf %49, %50 : vector<2x32xf32>
    %52 = arith.addf %7, %42 : vector<2x32xf32>
    %53 = arith.negf %52 : vector<2x32xf32>
    %54 = math.exp %53 : vector<2x32xf32>
    %cst_22 = arith.constant 1.000000e+00 : f32
    %55 = vector.broadcast %cst_22 : f32 to vector<2x32xf32>
    %56 = arith.addf %55, %54 : vector<2x32xf32>
    %57 = arith.divf %55, %56 : vector<2x32xf32>
    %58 = arith.mulf %51, %45 : vector<2x32xf32>
    %59 = arith.addf %8, %58 : vector<2x32xf32>
    %60 = math.tanh %59 : vector<2x32xf32>
    %cst_23 = arith.constant 1.000000e+00 : f32
    %61 = vector.broadcast %cst_23 : f32 to vector<2x32xf32>
    %62 = arith.subf %61, %57 : vector<2x32xf32>
    %63 = arith.mulf %62, %60 : vector<2x32xf32>
    %64 = arith.mulf %57, %39 : vector<2x32xf32>
    %65 = arith.addf %63, %64 : vector<2x32xf32>
    %c2 = arith.constant 2 : index
    %c0_24 = arith.constant 0 : index
    %66 = vector.load %arg8[%c2, %c0_24] : memref<32x32xf32, #tpu.memory_space<vmem>>, vector<2x32xf32>
    tpu.vector_store %arg8[%c2, %c0_24], %65 {strides = array<i32>} : memref<32x32xf32, #tpu.memory_space<vmem>>, vector<2x32xf32>,
    %cst_25 = arith.constant dense<0.000000e+00> : vector<2x32xf32>
    %67 = tpu.matmul %65, %10, %cst_25 {dimension_numbers = #tpu.dot_dimension_numbers<[1], [0], [0], [1], [0, 0, 1, 1], [], []>} : vector<2x32xf32>, vector<32x32xf32>, vector<2x32xf32> -> vector<2x32xf32>
    %cst_26 = arith.constant dense<0.000000e+00> : vector<2x32xf32>
    %68 = tpu.matmul %65, %11, %cst_26 {dimension_numbers = #tpu.dot_dimension_numbers<[1], [0], [0], [1], [0, 0, 1, 1], [], []>} : vector<2x32xf32>, vector<32x32xf32>, vector<2x32xf32> -> vector<2x32xf32>
    %cst_27 = arith.constant dense<0.000000e+00> : vector<2x32xf32>
    %69 = tpu.matmul %65, %12, %cst_27 {dimension_numbers = #tpu.dot_dimension_numbers<[1], [0], [0], [1], [0, 0, 1, 1], [], []>} : vector<2x32xf32>, vector<32x32xf32>, vector<2x32xf32> -> vector<2x32xf32>
    %70 = vector.broadcast %13 : vector<1x32xf32> to vector<2x32xf32>
    %71 = arith.addf %69, %70 : vector<2x32xf32>
    %72 = arith.addf %6, %67 : vector<2x32xf32>
    %73 = arith.negf %72 : vector<2x32xf32>
    %74 = math.exp %73 : vector<2x32xf32>
    %cst_28 = arith.constant 1.000000e+00 : f32
    %75 = vector.broadcast %cst_28 : f32 to vector<2x32xf32>
    %76 = arith.addf %75, %74 : vector<2x32xf32>
    %77 = arith.divf %75, %76 : vector<2x32xf32>
    %78 = arith.addf %7, %68 : vector<2x32xf32>
    %79 = arith.negf %78 : vector<2x32xf32>
    %80 = math.exp %79 : vector<2x32xf32>
    %cst_29 = arith.constant 1.000000e+00 : f32
    %81 = vector.broadcast %cst_29 : f32 to vector<2x32xf32>
    %82 = arith.addf %81, %80 : vector<2x32xf32>
    %83 = arith.divf %81, %82 : vector<2x32xf32>
    %84 = arith.mulf %77, %71 : vector<2x32xf32>
    %85 = arith.addf %8, %84 : vector<2x32xf32>
    %86 = math.tanh %85 : vector<2x32xf32>
    %cst_30 = arith.constant 1.000000e+00 : f32
    %87 = vector.broadcast %cst_30 : f32 to vector<2x32xf32>
    %88 = arith.subf %87, %83 : vector<2x32xf32>
    %89 = arith.mulf %88, %86 : vector<2x32xf32>
    %90 = arith.mulf %83, %65 : vector<2x32xf32>
    %91 = arith.addf %89, %90 : vector<2x32xf32>
    %c4 = arith.constant 4 : index
    %c0_31 = arith.constant 0 : index
    %92 = vector.load %arg8[%c4, %c0_31] : memref<32x32xf32, #tpu.memory_space<vmem>>, vector<2x32xf32>
    tpu.vector_store %arg8[%c4, %c0_31], %91 {strides = array<i32>} : memref<32x32xf32, #tpu.memory_space<vmem>>, vector<2x32xf32>,
    %cst_32 = arith.constant dense<0.000000e+00> : vector<2x32xf32>
    %93 = tpu.matmul %91, %10, %cst_32 {dimension_numbers = #tpu.dot_dimension_numbers<[1], [0], [0], [1], [0, 0, 1, 1], [], []>} : vector<2x32xf32>, vector<32x32xf32>, vector<2x32xf32> -> vector<2x32xf32>
    %cst_33 = arith.constant dense<0.000000e+00> : vector<2x32xf32>
    %94 = tpu.matmul %91, %11, %cst_33 {dimension_numbers = #tpu.dot_dimension_numbers<[1], [0], [0], [1], [0, 0, 1, 1], [], []>} : vector<2x32xf32>, vector<32x32xf32>, vector<2x32xf32> -> vector<2x32xf32>
    %cst_34 = arith.constant dense<0.000000e+00> : vector<2x32xf32>
    %95 = tpu.matmul %91, %12, %cst_34 {dimension_numbers = #tpu.dot_dimension_numbers<[1], [0], [0], [1], [0, 0, 1, 1], [], []>} : vector<2x32xf32>, vector<32x32xf32>, vector<2x32xf32> -> vector<2x32xf32>
    %96 = vector.broadcast %13 : vector<1x32xf32> to vector<2x32xf32>
    %97 = arith.addf %95, %96 : vector<2x32xf32>
    %98 = arith.addf %6, %93 : vector<2x32xf32>
    %99 = arith.negf %98 : vector<2x32xf32>
    %100 = math.exp %99 : vector<2x32xf32>
    %cst_35 = arith.constant 1.000000e+00 : f32
    %101 = vector.broadcast %cst_35 : f32 to vector<2x32xf32>
    %102 = arith.addf %101, %100 : vector<2x32xf32>
    %103 = arith.divf %101, %102 : vector<2x32xf32>
    %104 = arith.addf %7, %94 : vector<2x32xf32>
    %105 = arith.negf %104 : vector<2x32xf32>
    %106 = math.exp %105 : vector<2x32xf32>
    %cst_36 = arith.constant 1.000000e+00 : f32
    %107 = vector.broadcast %cst_36 : f32 to vector<2x32xf32>
    %108 = arith.addf %107, %106 : vector<2x32xf32>
    %109 = arith.divf %107, %108 : vector<2x32xf32>
    %110 = arith.mulf %103, %97 : vector<2x32xf32>
    %111 = arith.addf %8, %110 : vector<2x32xf32>
    %112 = math.tanh %111 : vector<2x32xf32>
    %cst_37 = arith.constant 1.000000e+00 : f32
    %113 = vector.broadcast %cst_37 : f32 to vector<2x32xf32>
    %114 = arith.subf %113, %109 : vector<2x32xf32>
    %115 = arith.mulf %114, %112 : vector<2x32xf32>
    %116 = arith.mulf %109, %91 : vector<2x32xf32>
    %117 = arith.addf %115, %116 : vector<2x32xf32>
    %c6 = arith.constant 6 : index
    %c0_38 = arith.constant 0 : index
    %118 = vector.load %arg8[%c6, %c0_38] : memref<32x32xf32, #tpu.memory_space<vmem>>, vector<2x32xf32>
    tpu.vector_store %arg8[%c6, %c0_38], %117 {strides = array<i32>} : memref<32x32xf32, #tpu.memory_space<vmem>>, vector<2x32xf32>,
    %cst_39 = arith.constant dense<0.000000e+00> : vector<2x32xf32>
    %119 = tpu.matmul %117, %10, %cst_39 {dimension_numbers = #tpu.dot_dimension_numbers<[1], [0], [0], [1], [0, 0, 1, 1], [], []>} : vector<2x32xf32>, vector<32x32xf32>, vector<2x32xf32> -> vector<2x32xf32>
    %cst_40 = arith.constant dense<0.000000e+00> : vector<2x32xf32>
    %120 = tpu.matmul %117, %11, %cst_40 {dimension_numbers = #tpu.dot_dimension_numbers<[1], [0], [0], [1], [0, 0, 1, 1], [], []>} : vector<2x32xf32>, vector<32x32xf32>, vector<2x32xf32> -> vector<2x32xf32>
    %cst_41 = arith.constant dense<0.000000e+00> : vector<2x32xf32>
    %121 = tpu.matmul %117, %12, %cst_41 {dimension_numbers = #tpu.dot_dimension_numbers<[1], [0], [0], [1], [0, 0, 1, 1], [], []>} : vector<2x32xf32>, vector<32x32xf32>, vector<2x32xf32> -> vector<2x32xf32>
    %122 = vector.broadcast %13 : vector<1x32xf32> to vector<2x32xf32>
    %123 = arith.addf %121, %122 : vector<2x32xf32>
    %124 = arith.addf %6, %119 : vector<2x32xf32>
    %125 = arith.negf %124 : vector<2x32xf32>
    %126 = math.exp %125 : vector<2x32xf32>
    %cst_42 = arith.constant 1.000000e+00 : f32
    %127 = vector.broadcast %cst_42 : f32 to vector<2x32xf32>
    %128 = arith.addf %127, %126 : vector<2x32xf32>
    %129 = arith.divf %127, %128 : vector<2x32xf32>
    %130 = arith.addf %7, %120 : vector<2x32xf32>
    %131 = arith.negf %130 : vector<2x32xf32>
    %132 = math.exp %131 : vector<2x32xf32>
    %cst_43 = arith.constant 1.000000e+00 : f32
    %133 = vector.broadcast %cst_43 : f32 to vector<2x32xf32>
    %134 = arith.addf %133, %132 : vector<2x32xf32>
    %135 = arith.divf %133, %134 : vector<2x32xf32>
    %136 = arith.mulf %129, %123 : vector<2x32xf32>
    %137 = arith.addf %8, %136 : vector<2x32xf32>
    %138 = math.tanh %137 : vector<2x32xf32>
    %cst_44 = arith.constant 1.000000e+00 : f32
    %139 = vector.broadcast %cst_44 : f32 to vector<2x32xf32>
    %140 = arith.subf %139, %135 : vector<2x32xf32>
    %141 = arith.mulf %140, %138 : vector<2x32xf32>
    %142 = arith.mulf %135, %117 : vector<2x32xf32>
    %143 = arith.addf %141, %142 : vector<2x32xf32>
    %c8 = arith.constant 8 : index
    %c0_45 = arith.constant 0 : index
    %144 = vector.load %arg8[%c8, %c0_45] : memref<32x32xf32, #tpu.memory_space<vmem>>, vector<2x32xf32>
    tpu.vector_store %arg8[%c8, %c0_45], %143 {strides = array<i32>} : memref<32x32xf32, #tpu.memory_space<vmem>>, vector<2x32xf32>,
    %cst_46 = arith.constant dense<0.000000e+00> : vector<2x32xf32>
    %145 = tpu.matmul %143, %10, %cst_46 {dimension_numbers = #tpu.dot_dimension_numbers<[1], [0], [0], [1], [0, 0, 1, 1], [], []>} : vector<2x32xf32>, vector<32x32xf32>, vector<2x32xf32> -> vector<2x32xf32>
    %cst_47 = arith.constant dense<0.000000e+00> : vector<2x32xf32>
    %146 = tpu.matmul %143, %11, %cst_47 {dimension_numbers = #tpu.dot_dimension_numbers<[1], [0], [0], [1], [0, 0, 1, 1], [], []>} : vector<2x32xf32>, vector<32x32xf32>, vector<2x32xf32> -> vector<2x32xf32>
    %cst_48 = arith.constant dense<0.000000e+00> : vector<2x32xf32>
    %147 = tpu.matmul %143, %12, %cst_48 {dimension_numbers = #tpu.dot_dimension_numbers<[1], [0], [0], [1], [0, 0, 1, 1], [], []>} : vector<2x32xf32>, vector<32x32xf32>, vector<2x32xf32> -> vector<2x32xf32>
    %148 = vector.broadcast %13 : vector<1x32xf32> to vector<2x32xf32>
    %149 = arith.addf %147, %148 : vector<2x32xf32>
    %150 = arith.addf %6, %145 : vector<2x32xf32>
    %151 = arith.negf %150 : vector<2x32xf32>
    %152 = math.exp %151 : vector<2x32xf32>
    %cst_49 = arith.constant 1.000000e+00 : f32
    %153 = vector.broadcast %cst_49 : f32 to vector<2x32xf32>
    %154 = arith.addf %153, %152 : vector<2x32xf32>
    %155 = arith.divf %153, %154 : vector<2x32xf32>
    %156 = arith.addf %7, %146 : vector<2x32xf32>
    %157 = arith.negf %156 : vector<2x32xf32>
    %158 = math.exp %157 : vector<2x32xf32>
    %cst_50 = arith.constant 1.000000e+00 : f32
    %159 = vector.broadcast %cst_50 : f32 to vector<2x32xf32>
    %160 = arith.addf %159, %158 : vector<2x32xf32>
    %161 = arith.divf %159, %160 : vector<2x32xf32>
    %162 = arith.mulf %155, %149 : vector<2x32xf32>
    %163 = arith.addf %8, %162 : vector<2x32xf32>
    %164 = math.tanh %163 : vector<2x32xf32>
    %cst_51 = arith.constant 1.000000e+00 : f32
    %165 = vector.broadcast %cst_51 : f32 to vector<2x32xf32>
    %166 = arith.subf %165, %161 : vector<2x32xf32>
    %167 = arith.mulf %166, %164 : vector<2x32xf32>
    %168 = arith.mulf %161, %143 : vector<2x32xf32>
    %169 = arith.addf %167, %168 : vector<2x32xf32>
    %c10 = arith.constant 10 : index
    %c0_52 = arith.constant 0 : index
    %170 = vector.load %arg8[%c10, %c0_52] : memref<32x32xf32, #tpu.memory_space<vmem>>, vector<2x32xf32>
    tpu.vector_store %arg8[%c10, %c0_52], %169 {strides = array<i32>} : memref<32x32xf32, #tpu.memory_space<vmem>>, vector<2x32xf32>,
    %cst_53 = arith.constant dense<0.000000e+00> : vector<2x32xf32>
    %171 = tpu.matmul %169, %10, %cst_53 {dimension_numbers = #tpu.dot_dimension_numbers<[1], [0], [0], [1], [0, 0, 1, 1], [], []>} : vector<2x32xf32>, vector<32x32xf32>, vector<2x32xf32> -> vector<2x32xf32>
    %cst_54 = arith.constant dense<0.000000e+00> : vector<2x32xf32>
    %172 = tpu.matmul %169, %11, %cst_54 {dimension_numbers = #tpu.dot_dimension_numbers<[1], [0], [0], [1], [0, 0, 1, 1], [], []>} : vector<2x32xf32>, vector<32x32xf32>, vector<2x32xf32> -> vector<2x32xf32>
    %cst_55 = arith.constant dense<0.000000e+00> : vector<2x32xf32>
    %173 = tpu.matmul %169, %12, %cst_55 {dimension_numbers = #tpu.dot_dimension_numbers<[1], [0], [0], [1], [0, 0, 1, 1], [], []>} : vector<2x32xf32>, vector<32x32xf32>, vector<2x32xf32> -> vector<2x32xf32>
    %174 = vector.broadcast %13 : vector<1x32xf32> to vector<2x32xf32>
    %175 = arith.addf %173, %174 : vector<2x32xf32>
    %176 = arith.addf %6, %171 : vector<2x32xf32>
    %177 = arith.negf %176 : vector<2x32xf32>
    %178 = math.exp %177 : vector<2x32xf32>
    %cst_56 = arith.constant 1.000000e+00 : f32
    %179 = vector.broadcast %cst_56 : f32 to vector<2x32xf32>
    %180 = arith.addf %179, %178 : vector<2x32xf32>
    %181 = arith.divf %179, %180 : vector<2x32xf32>
    %182 = arith.addf %7, %172 : vector<2x32xf32>
    %183 = arith.negf %182 : vector<2x32xf32>
    %184 = math.exp %183 : vector<2x32xf32>
    %cst_57 = arith.constant 1.000000e+00 : f32
    %185 = vector.broadcast %cst_57 : f32 to vector<2x32xf32>
    %186 = arith.addf %185, %184 : vector<2x32xf32>
    %187 = arith.divf %185, %186 : vector<2x32xf32>
    %188 = arith.mulf %181, %175 : vector<2x32xf32>
    %189 = arith.addf %8, %188 : vector<2x32xf32>
    %190 = math.tanh %189 : vector<2x32xf32>
    %cst_58 = arith.constant 1.000000e+00 : f32
    %191 = vector.broadcast %cst_58 : f32 to vector<2x32xf32>
    %192 = arith.subf %191, %187 : vector<2x32xf32>
    %193 = arith.mulf %192, %190 : vector<2x32xf32>
    %194 = arith.mulf %187, %169 : vector<2x32xf32>
    %195 = arith.addf %193, %194 : vector<2x32xf32>
    %c12 = arith.constant 12 : index
    %c0_59 = arith.constant 0 : index
    %196 = vector.load %arg8[%c12, %c0_59] : memref<32x32xf32, #tpu.memory_space<vmem>>, vector<2x32xf32>
    tpu.vector_store %arg8[%c12, %c0_59], %195 {strides = array<i32>} : memref<32x32xf32, #tpu.memory_space<vmem>>, vector<2x32xf32>,
    %cst_60 = arith.constant dense<0.000000e+00> : vector<2x32xf32>
    %197 = tpu.matmul %195, %10, %cst_60 {dimension_numbers = #tpu.dot_dimension_numbers<[1], [0], [0], [1], [0, 0, 1, 1], [], []>} : vector<2x32xf32>, vector<32x32xf32>, vector<2x32xf32> -> vector<2x32xf32>
    %cst_61 = arith.constant dense<0.000000e+00> : vector<2x32xf32>
    %198 = tpu.matmul %195, %11, %cst_61 {dimension_numbers = #tpu.dot_dimension_numbers<[1], [0], [0], [1], [0, 0, 1, 1], [], []>} : vector<2x32xf32>, vector<32x32xf32>, vector<2x32xf32> -> vector<2x32xf32>
    %cst_62 = arith.constant dense<0.000000e+00> : vector<2x32xf32>
    %199 = tpu.matmul %195, %12, %cst_62 {dimension_numbers = #tpu.dot_dimension_numbers<[1], [0], [0], [1], [0, 0, 1, 1], [], []>} : vector<2x32xf32>, vector<32x32xf32>, vector<2x32xf32> -> vector<2x32xf32>
    %200 = vector.broadcast %13 : vector<1x32xf32> to vector<2x32xf32>
    %201 = arith.addf %199, %200 : vector<2x32xf32>
    %202 = arith.addf %6, %197 : vector<2x32xf32>
    %203 = arith.negf %202 : vector<2x32xf32>
    %204 = math.exp %203 : vector<2x32xf32>
    %cst_63 = arith.constant 1.000000e+00 : f32
    %205 = vector.broadcast %cst_63 : f32 to vector<2x32xf32>
    %206 = arith.addf %205, %204 : vector<2x32xf32>
    %207 = arith.divf %205, %206 : vector<2x32xf32>
    %208 = arith.addf %7, %198 : vector<2x32xf32>
    %209 = arith.negf %208 : vector<2x32xf32>
    %210 = math.exp %209 : vector<2x32xf32>
    %cst_64 = arith.constant 1.000000e+00 : f32
    %211 = vector.broadcast %cst_64 : f32 to vector<2x32xf32>
    %212 = arith.addf %211, %210 : vector<2x32xf32>
    %213 = arith.divf %211, %212 : vector<2x32xf32>
    %214 = arith.mulf %207, %201 : vector<2x32xf32>
    %215 = arith.addf %8, %214 : vector<2x32xf32>
    %216 = math.tanh %215 : vector<2x32xf32>
    %cst_65 = arith.constant 1.000000e+00 : f32
    %217 = vector.broadcast %cst_65 : f32 to vector<2x32xf32>
    %218 = arith.subf %217, %213 : vector<2x32xf32>
    %219 = arith.mulf %218, %216 : vector<2x32xf32>
    %220 = arith.mulf %213, %195 : vector<2x32xf32>
    %221 = arith.addf %219, %220 : vector<2x32xf32>
    %c14 = arith.constant 14 : index
    %c0_66 = arith.constant 0 : index
    %222 = vector.load %arg8[%c14, %c0_66] : memref<32x32xf32, #tpu.memory_space<vmem>>, vector<2x32xf32>
    tpu.vector_store %arg8[%c14, %c0_66], %221 {strides = array<i32>} : memref<32x32xf32, #tpu.memory_space<vmem>>, vector<2x32xf32>,
    %cst_67 = arith.constant dense<0.000000e+00> : vector<2x32xf32>
    %223 = tpu.matmul %221, %10, %cst_67 {dimension_numbers = #tpu.dot_dimension_numbers<[1], [0], [0], [1], [0, 0, 1, 1], [], []>} : vector<2x32xf32>, vector<32x32xf32>, vector<2x32xf32> -> vector<2x32xf32>
    %cst_68 = arith.constant dense<0.000000e+00> : vector<2x32xf32>
    %224 = tpu.matmul %221, %11, %cst_68 {dimension_numbers = #tpu.dot_dimension_numbers<[1], [0], [0], [1], [0, 0, 1, 1], [], []>} : vector<2x32xf32>, vector<32x32xf32>, vector<2x32xf32> -> vector<2x32xf32>
    %cst_69 = arith.constant dense<0.000000e+00> : vector<2x32xf32>
    %225 = tpu.matmul %221, %12, %cst_69 {dimension_numbers = #tpu.dot_dimension_numbers<[1], [0], [0], [1], [0, 0, 1, 1], [], []>} : vector<2x32xf32>, vector<32x32xf32>, vector<2x32xf32> -> vector<2x32xf32>
    %226 = vector.broadcast %13 : vector<1x32xf32> to vector<2x32xf32>
    %227 = arith.addf %225, %226 : vector<2x32xf32>
    %228 = arith.addf %6, %223 : vector<2x32xf32>
    %229 = arith.negf %228 : vector<2x32xf32>
    %230 = math.exp %229 : vector<2x32xf32>
    %cst_70 = arith.constant 1.000000e+00 : f32
    %231 = vector.broadcast %cst_70 : f32 to vector<2x32xf32>
    %232 = arith.addf %231, %230 : vector<2x32xf32>
    %233 = arith.divf %231, %232 : vector<2x32xf32>
    %234 = arith.addf %7, %224 : vector<2x32xf32>
    %235 = arith.negf %234 : vector<2x32xf32>
    %236 = math.exp %235 : vector<2x32xf32>
    %cst_71 = arith.constant 1.000000e+00 : f32
    %237 = vector.broadcast %cst_71 : f32 to vector<2x32xf32>
    %238 = arith.addf %237, %236 : vector<2x32xf32>
    %239 = arith.divf %237, %238 : vector<2x32xf32>
    %240 = arith.mulf %233, %227 : vector<2x32xf32>
    %241 = arith.addf %8, %240 : vector<2x32xf32>
    %242 = math.tanh %241 : vector<2x32xf32>
    %cst_72 = arith.constant 1.000000e+00 : f32
    %243 = vector.broadcast %cst_72 : f32 to vector<2x32xf32>
    %244 = arith.subf %243, %239 : vector<2x32xf32>
    %245 = arith.mulf %244, %242 : vector<2x32xf32>
    %246 = arith.mulf %239, %221 : vector<2x32xf32>
    %247 = arith.addf %245, %246 : vector<2x32xf32>
    %c16 = arith.constant 16 : index
    %c0_73 = arith.constant 0 : index
    %248 = vector.load %arg8[%c16, %c0_73] : memref<32x32xf32, #tpu.memory_space<vmem>>, vector<2x32xf32>
    tpu.vector_store %arg8[%c16, %c0_73], %247 {strides = array<i32>} : memref<32x32xf32, #tpu.memory_space<vmem>>, vector<2x32xf32>,
    %cst_74 = arith.constant dense<0.000000e+00> : vector<2x32xf32>
    %249 = tpu.matmul %247, %10, %cst_74 {dimension_numbers = #tpu.dot_dimension_numbers<[1], [0], [0], [1], [0, 0, 1, 1], [], []>} : vector<2x32xf32>, vector<32x32xf32>, vector<2x32xf32> -> vector<2x32xf32>
    %cst_75 = arith.constant dense<0.000000e+00> : vector<2x32xf32>
    %250 = tpu.matmul %247, %11, %cst_75 {dimension_numbers = #tpu.dot_dimension_numbers<[1], [0], [0], [1], [0, 0, 1, 1], [], []>} : vector<2x32xf32>, vector<32x32xf32>, vector<2x32xf32> -> vector<2x32xf32>
    %cst_76 = arith.constant dense<0.000000e+00> : vector<2x32xf32>
    %251 = tpu.matmul %247, %12, %cst_76 {dimension_numbers = #tpu.dot_dimension_numbers<[1], [0], [0], [1], [0, 0, 1, 1], [], []>} : vector<2x32xf32>, vector<32x32xf32>, vector<2x32xf32> -> vector<2x32xf32>
    %252 = vector.broadcast %13 : vector<1x32xf32> to vector<2x32xf32>
    %253 = arith.addf %251, %252 : vector<2x32xf32>
    %254 = arith.addf %6, %249 : vector<2x32xf32>
    %255 = arith.negf %254 : vector<2x32xf32>
    %256 = math.exp %255 : vector<2x32xf32>
    %cst_77 = arith.constant 1.000000e+00 : f32
    %257 = vector.broadcast %cst_77 : f32 to vector<2x32xf32>
    %258 = arith.addf %257, %256 : vector<2x32xf32>
    %259 = arith.divf %257, %258 : vector<2x32xf32>
    %260 = arith.addf %7, %250 : vector<2x32xf32>
    %261 = arith.negf %260 : vector<2x32xf32>
    %262 = math.exp %261 : vector<2x32xf32>
    %cst_78 = arith.constant 1.000000e+00 : f32
    %263 = vector.broadcast %cst_78 : f32 to vector<2x32xf32>
    %264 = arith.addf %263, %262 : vector<2x32xf32>
    %265 = arith.divf %263, %264 : vector<2x32xf32>
    %266 = arith.mulf %259, %253 : vector<2x32xf32>
    %267 = arith.addf %8, %266 : vector<2x32xf32>
    %268 = math.tanh %267 : vector<2x32xf32>
    %cst_79 = arith.constant 1.000000e+00 : f32
    %269 = vector.broadcast %cst_79 : f32 to vector<2x32xf32>
    %270 = arith.subf %269, %265 : vector<2x32xf32>
    %271 = arith.mulf %270, %268 : vector<2x32xf32>
    %272 = arith.mulf %265, %247 : vector<2x32xf32>
    %273 = arith.addf %271, %272 : vector<2x32xf32>
    %c18 = arith.constant 18 : index
    %c0_80 = arith.constant 0 : index
    %274 = vector.load %arg8[%c18, %c0_80] : memref<32x32xf32, #tpu.memory_space<vmem>>, vector<2x32xf32>
    tpu.vector_store %arg8[%c18, %c0_80], %273 {strides = array<i32>} : memref<32x32xf32, #tpu.memory_space<vmem>>, vector<2x32xf32>,
    %cst_81 = arith.constant dense<0.000000e+00> : vector<2x32xf32>
    %275 = tpu.matmul %273, %10, %cst_81 {dimension_numbers = #tpu.dot_dimension_numbers<[1], [0], [0], [1], [0, 0, 1, 1], [], []>} : vector<2x32xf32>, vector<32x32xf32>, vector<2x32xf32> -> vector<2x32xf32>
    %cst_82 = arith.constant dense<0.000000e+00> : vector<2x32xf32>
    %276 = tpu.matmul %273, %11, %cst_82 {dimension_numbers = #tpu.dot_dimension_numbers<[1], [0], [0], [1], [0, 0, 1, 1], [], []>} : vector<2x32xf32>, vector<32x32xf32>, vector<2x32xf32> -> vector<2x32xf32>
    %cst_83 = arith.constant dense<0.000000e+00> : vector<2x32xf32>
    %277 = tpu.matmul %273, %12, %cst_83 {dimension_numbers = #tpu.dot_dimension_numbers<[1], [0], [0], [1], [0, 0, 1, 1], [], []>} : vector<2x32xf32>, vector<32x32xf32>, vector<2x32xf32> -> vector<2x32xf32>
    %278 = vector.broadcast %13 : vector<1x32xf32> to vector<2x32xf32>
    %279 = arith.addf %277, %278 : vector<2x32xf32>
    %280 = arith.addf %6, %275 : vector<2x32xf32>
    %281 = arith.negf %280 : vector<2x32xf32>
    %282 = math.exp %281 : vector<2x32xf32>
    %cst_84 = arith.constant 1.000000e+00 : f32
    %283 = vector.broadcast %cst_84 : f32 to vector<2x32xf32>
    %284 = arith.addf %283, %282 : vector<2x32xf32>
    %285 = arith.divf %283, %284 : vector<2x32xf32>
    %286 = arith.addf %7, %276 : vector<2x32xf32>
    %287 = arith.negf %286 : vector<2x32xf32>
    %288 = math.exp %287 : vector<2x32xf32>
    %cst_85 = arith.constant 1.000000e+00 : f32
    %289 = vector.broadcast %cst_85 : f32 to vector<2x32xf32>
    %290 = arith.addf %289, %288 : vector<2x32xf32>
    %291 = arith.divf %289, %290 : vector<2x32xf32>
    %292 = arith.mulf %285, %279 : vector<2x32xf32>
    %293 = arith.addf %8, %292 : vector<2x32xf32>
    %294 = math.tanh %293 : vector<2x32xf32>
    %cst_86 = arith.constant 1.000000e+00 : f32
    %295 = vector.broadcast %cst_86 : f32 to vector<2x32xf32>
    %296 = arith.subf %295, %291 : vector<2x32xf32>
    %297 = arith.mulf %296, %294 : vector<2x32xf32>
    %298 = arith.mulf %291, %273 : vector<2x32xf32>
    %299 = arith.addf %297, %298 : vector<2x32xf32>
    %c20 = arith.constant 20 : index
    %c0_87 = arith.constant 0 : index
    %300 = vector.load %arg8[%c20, %c0_87] : memref<32x32xf32, #tpu.memory_space<vmem>>, vector<2x32xf32>
    tpu.vector_store %arg8[%c20, %c0_87], %299 {strides = array<i32>} : memref<32x32xf32, #tpu.memory_space<vmem>>, vector<2x32xf32>,
    %cst_88 = arith.constant dense<0.000000e+00> : vector<2x32xf32>
    %301 = tpu.matmul %299, %10, %cst_88 {dimension_numbers = #tpu.dot_dimension_numbers<[1], [0], [0], [1], [0, 0, 1, 1], [], []>} : vector<2x32xf32>, vector<32x32xf32>, vector<2x32xf32> -> vector<2x32xf32>
    %cst_89 = arith.constant dense<0.000000e+00> : vector<2x32xf32>
    %302 = tpu.matmul %299, %11, %cst_89 {dimension_numbers = #tpu.dot_dimension_numbers<[1], [0], [0], [1], [0, 0, 1, 1], [], []>} : vector<2x32xf32>, vector<32x32xf32>, vector<2x32xf32> -> vector<2x32xf32>
    %cst_90 = arith.constant dense<0.000000e+00> : vector<2x32xf32>
    %303 = tpu.matmul %299, %12, %cst_90 {dimension_numbers = #tpu.dot_dimension_numbers<[1], [0], [0], [1], [0, 0, 1, 1], [], []>} : vector<2x32xf32>, vector<32x32xf32>, vector<2x32xf32> -> vector<2x32xf32>
    %304 = vector.broadcast %13 : vector<1x32xf32> to vector<2x32xf32>
    %305 = arith.addf %303, %304 : vector<2x32xf32>
    %306 = arith.addf %6, %301 : vector<2x32xf32>
    %307 = arith.negf %306 : vector<2x32xf32>
    %308 = math.exp %307 : vector<2x32xf32>
    %cst_91 = arith.constant 1.000000e+00 : f32
    %309 = vector.broadcast %cst_91 : f32 to vector<2x32xf32>
    %310 = arith.addf %309, %308 : vector<2x32xf32>
    %311 = arith.divf %309, %310 : vector<2x32xf32>
    %312 = arith.addf %7, %302 : vector<2x32xf32>
    %313 = arith.negf %312 : vector<2x32xf32>
    %314 = math.exp %313 : vector<2x32xf32>
    %cst_92 = arith.constant 1.000000e+00 : f32
    %315 = vector.broadcast %cst_92 : f32 to vector<2x32xf32>
    %316 = arith.addf %315, %314 : vector<2x32xf32>
    %317 = arith.divf %315, %316 : vector<2x32xf32>
    %318 = arith.mulf %311, %305 : vector<2x32xf32>
    %319 = arith.addf %8, %318 : vector<2x32xf32>
    %320 = math.tanh %319 : vector<2x32xf32>
    %cst_93 = arith.constant 1.000000e+00 : f32
    %321 = vector.broadcast %cst_93 : f32 to vector<2x32xf32>
    %322 = arith.subf %321, %317 : vector<2x32xf32>
    %323 = arith.mulf %322, %320 : vector<2x32xf32>
    %324 = arith.mulf %317, %299 : vector<2x32xf32>
    %325 = arith.addf %323, %324 : vector<2x32xf32>
    %c22 = arith.constant 22 : index
    %c0_94 = arith.constant 0 : index
    %326 = vector.load %arg8[%c22, %c0_94] : memref<32x32xf32, #tpu.memory_space<vmem>>, vector<2x32xf32>
    tpu.vector_store %arg8[%c22, %c0_94], %325 {strides = array<i32>} : memref<32x32xf32, #tpu.memory_space<vmem>>, vector<2x32xf32>,
    %cst_95 = arith.constant dense<0.000000e+00> : vector<2x32xf32>
    %327 = tpu.matmul %325, %10, %cst_95 {dimension_numbers = #tpu.dot_dimension_numbers<[1], [0], [0], [1], [0, 0, 1, 1], [], []>} : vector<2x32xf32>, vector<32x32xf32>, vector<2x32xf32> -> vector<2x32xf32>
    %cst_96 = arith.constant dense<0.000000e+00> : vector<2x32xf32>
    %328 = tpu.matmul %325, %11, %cst_96 {dimension_numbers = #tpu.dot_dimension_numbers<[1], [0], [0], [1], [0, 0, 1, 1], [], []>} : vector<2x32xf32>, vector<32x32xf32>, vector<2x32xf32> -> vector<2x32xf32>
    %cst_97 = arith.constant dense<0.000000e+00> : vector<2x32xf32>
    %329 = tpu.matmul %325, %12, %cst_97 {dimension_numbers = #tpu.dot_dimension_numbers<[1], [0], [0], [1], [0, 0, 1, 1], [], []>} : vector<2x32xf32>, vector<32x32xf32>, vector<2x32xf32> -> vector<2x32xf32>
    %330 = vector.broadcast %13 : vector<1x32xf32> to vector<2x32xf32>
    %331 = arith.addf %329, %330 : vector<2x32xf32>
    %332 = arith.addf %6, %327 : vector<2x32xf32>
    %333 = arith.negf %332 : vector<2x32xf32>
    %334 = math.exp %333 : vector<2x32xf32>
    %cst_98 = arith.constant 1.000000e+00 : f32
    %335 = vector.broadcast %cst_98 : f32 to vector<2x32xf32>
    %336 = arith.addf %335, %334 : vector<2x32xf32>
    %337 = arith.divf %335, %336 : vector<2x32xf32>
    %338 = arith.addf %7, %328 : vector<2x32xf32>
    %339 = arith.negf %338 : vector<2x32xf32>
    %340 = math.exp %339 : vector<2x32xf32>
    %cst_99 = arith.constant 1.000000e+00 : f32
    %341 = vector.broadcast %cst_99 : f32 to vector<2x32xf32>
    %342 = arith.addf %341, %340 : vector<2x32xf32>
    %343 = arith.divf %341, %342 : vector<2x32xf32>
    %344 = arith.mulf %337, %331 : vector<2x32xf32>
    %345 = arith.addf %8, %344 : vector<2x32xf32>
    %346 = math.tanh %345 : vector<2x32xf32>
    %cst_100 = arith.constant 1.000000e+00 : f32
    %347 = vector.broadcast %cst_100 : f32 to vector<2x32xf32>
    %348 = arith.subf %347, %343 : vector<2x32xf32>
    %349 = arith.mulf %348, %346 : vector<2x32xf32>
    %350 = arith.mulf %343, %325 : vector<2x32xf32>
    %351 = arith.addf %349, %350 : vector<2x32xf32>
    %c24 = arith.constant 24 : index
    %c0_101 = arith.constant 0 : index
    %352 = vector.load %arg8[%c24, %c0_101] : memref<32x32xf32, #tpu.memory_space<vmem>>, vector<2x32xf32>
    tpu.vector_store %arg8[%c24, %c0_101], %351 {strides = array<i32>} : memref<32x32xf32, #tpu.memory_space<vmem>>, vector<2x32xf32>,
    %cst_102 = arith.constant dense<0.000000e+00> : vector<2x32xf32>
    %353 = tpu.matmul %351, %10, %cst_102 {dimension_numbers = #tpu.dot_dimension_numbers<[1], [0], [0], [1], [0, 0, 1, 1], [], []>} : vector<2x32xf32>, vector<32x32xf32>, vector<2x32xf32> -> vector<2x32xf32>
    %cst_103 = arith.constant dense<0.000000e+00> : vector<2x32xf32>
    %354 = tpu.matmul %351, %11, %cst_103 {dimension_numbers = #tpu.dot_dimension_numbers<[1], [0], [0], [1], [0, 0, 1, 1], [], []>} : vector<2x32xf32>, vector<32x32xf32>, vector<2x32xf32> -> vector<2x32xf32>
    %cst_104 = arith.constant dense<0.000000e+00> : vector<2x32xf32>
    %355 = tpu.matmul %351, %12, %cst_104 {dimension_numbers = #tpu.dot_dimension_numbers<[1], [0], [0], [1], [0, 0, 1, 1], [], []>} : vector<2x32xf32>, vector<32x32xf32>, vector<2x32xf32> -> vector<2x32xf32>
    %356 = vector.broadcast %13 : vector<1x32xf32> to vector<2x32xf32>
    %357 = arith.addf %355, %356 : vector<2x32xf32>
    %358 = arith.addf %6, %353 : vector<2x32xf32>
    %359 = arith.negf %358 : vector<2x32xf32>
    %360 = math.exp %359 : vector<2x32xf32>
    %cst_105 = arith.constant 1.000000e+00 : f32
    %361 = vector.broadcast %cst_105 : f32 to vector<2x32xf32>
    %362 = arith.addf %361, %360 : vector<2x32xf32>
    %363 = arith.divf %361, %362 : vector<2x32xf32>
    %364 = arith.addf %7, %354 : vector<2x32xf32>
    %365 = arith.negf %364 : vector<2x32xf32>
    %366 = math.exp %365 : vector<2x32xf32>
    %cst_106 = arith.constant 1.000000e+00 : f32
    %367 = vector.broadcast %cst_106 : f32 to vector<2x32xf32>
    %368 = arith.addf %367, %366 : vector<2x32xf32>
    %369 = arith.divf %367, %368 : vector<2x32xf32>
    %370 = arith.mulf %363, %357 : vector<2x32xf32>
    %371 = arith.addf %8, %370 : vector<2x32xf32>
    %372 = math.tanh %371 : vector<2x32xf32>
    %cst_107 = arith.constant 1.000000e+00 : f32
    %373 = vector.broadcast %cst_107 : f32 to vector<2x32xf32>
    %374 = arith.subf %373, %369 : vector<2x32xf32>
    %375 = arith.mulf %374, %372 : vector<2x32xf32>
    %376 = arith.mulf %369, %351 : vector<2x32xf32>
    %377 = arith.addf %375, %376 : vector<2x32xf32>
    %c26 = arith.constant 26 : index
    %c0_108 = arith.constant 0 : index
    %378 = vector.load %arg8[%c26, %c0_108] : memref<32x32xf32, #tpu.memory_space<vmem>>, vector<2x32xf32>
    tpu.vector_store %arg8[%c26, %c0_108], %377 {strides = array<i32>} : memref<32x32xf32, #tpu.memory_space<vmem>>, vector<2x32xf32>,
    %cst_109 = arith.constant dense<0.000000e+00> : vector<2x32xf32>
    %379 = tpu.matmul %377, %10, %cst_109 {dimension_numbers = #tpu.dot_dimension_numbers<[1], [0], [0], [1], [0, 0, 1, 1], [], []>} : vector<2x32xf32>, vector<32x32xf32>, vector<2x32xf32> -> vector<2x32xf32>
    %cst_110 = arith.constant dense<0.000000e+00> : vector<2x32xf32>
    %380 = tpu.matmul %377, %11, %cst_110 {dimension_numbers = #tpu.dot_dimension_numbers<[1], [0], [0], [1], [0, 0, 1, 1], [], []>} : vector<2x32xf32>, vector<32x32xf32>, vector<2x32xf32> -> vector<2x32xf32>
    %cst_111 = arith.constant dense<0.000000e+00> : vector<2x32xf32>
    %381 = tpu.matmul %377, %12, %cst_111 {dimension_numbers = #tpu.dot_dimension_numbers<[1], [0], [0], [1], [0, 0, 1, 1], [], []>} : vector<2x32xf32>, vector<32x32xf32>, vector<2x32xf32> -> vector<2x32xf32>
    %382 = vector.broadcast %13 : vector<1x32xf32> to vector<2x32xf32>
    %383 = arith.addf %381, %382 : vector<2x32xf32>
    %384 = arith.addf %6, %379 : vector<2x32xf32>
    %385 = arith.negf %384 : vector<2x32xf32>
    %386 = math.exp %385 : vector<2x32xf32>
    %cst_112 = arith.constant 1.000000e+00 : f32
    %387 = vector.broadcast %cst_112 : f32 to vector<2x32xf32>
    %388 = arith.addf %387, %386 : vector<2x32xf32>
    %389 = arith.divf %387, %388 : vector<2x32xf32>
    %390 = arith.addf %7, %380 : vector<2x32xf32>
    %391 = arith.negf %390 : vector<2x32xf32>
    %392 = math.exp %391 : vector<2x32xf32>
    %cst_113 = arith.constant 1.000000e+00 : f32
    %393 = vector.broadcast %cst_113 : f32 to vector<2x32xf32>
    %394 = arith.addf %393, %392 : vector<2x32xf32>
    %395 = arith.divf %393, %394 : vector<2x32xf32>
    %396 = arith.mulf %389, %383 : vector<2x32xf32>
    %397 = arith.addf %8, %396 : vector<2x32xf32>
    %398 = math.tanh %397 : vector<2x32xf32>
    %cst_114 = arith.constant 1.000000e+00 : f32
    %399 = vector.broadcast %cst_114 : f32 to vector<2x32xf32>
    %400 = arith.subf %399, %395 : vector<2x32xf32>
    %401 = arith.mulf %400, %398 : vector<2x32xf32>
    %402 = arith.mulf %395, %377 : vector<2x32xf32>
    %403 = arith.addf %401, %402 : vector<2x32xf32>
    %c28 = arith.constant 28 : index
    %c0_115 = arith.constant 0 : index
    %404 = vector.load %arg8[%c28, %c0_115] : memref<32x32xf32, #tpu.memory_space<vmem>>, vector<2x32xf32>
    tpu.vector_store %arg8[%c28, %c0_115], %403 {strides = array<i32>} : memref<32x32xf32, #tpu.memory_space<vmem>>, vector<2x32xf32>,
    %cst_116 = arith.constant dense<0.000000e+00> : vector<2x32xf32>
    %405 = tpu.matmul %403, %10, %cst_116 {dimension_numbers = #tpu.dot_dimension_numbers<[1], [0], [0], [1], [0, 0, 1, 1], [], []>} : vector<2x32xf32>, vector<32x32xf32>, vector<2x32xf32> -> vector<2x32xf32>
    %cst_117 = arith.constant dense<0.000000e+00> : vector<2x32xf32>
    %406 = tpu.matmul %403, %11, %cst_117 {dimension_numbers = #tpu.dot_dimension_numbers<[1], [0], [0], [1], [0, 0, 1, 1], [], []>} : vector<2x32xf32>, vector<32x32xf32>, vector<2x32xf32> -> vector<2x32xf32>
    %cst_118 = arith.constant dense<0.000000e+00> : vector<2x32xf32>
    %407 = tpu.matmul %403, %12, %cst_118 {dimension_numbers = #tpu.dot_dimension_numbers<[1], [0], [0], [1], [0, 0, 1, 1], [], []>} : vector<2x32xf32>, vector<32x32xf32>, vector<2x32xf32> -> vector<2x32xf32>
    %408 = vector.broadcast %13 : vector<1x32xf32> to vector<2x32xf32>
    %409 = arith.addf %407, %408 : vector<2x32xf32>
    %410 = arith.addf %6, %405 : vector<2x32xf32>
    %411 = arith.negf %410 : vector<2x32xf32>
    %412 = math.exp %411 : vector<2x32xf32>
    %cst_119 = arith.constant 1.000000e+00 : f32
    %413 = vector.broadcast %cst_119 : f32 to vector<2x32xf32>
    %414 = arith.addf %413, %412 : vector<2x32xf32>
    %415 = arith.divf %413, %414 : vector<2x32xf32>
    %416 = arith.addf %7, %406 : vector<2x32xf32>
    %417 = arith.negf %416 : vector<2x32xf32>
    %418 = math.exp %417 : vector<2x32xf32>
    %cst_120 = arith.constant 1.000000e+00 : f32
    %419 = vector.broadcast %cst_120 : f32 to vector<2x32xf32>
    %420 = arith.addf %419, %418 : vector<2x32xf32>
    %421 = arith.divf %419, %420 : vector<2x32xf32>
    %422 = arith.mulf %415, %409 : vector<2x32xf32>
    %423 = arith.addf %8, %422 : vector<2x32xf32>
    %424 = math.tanh %423 : vector<2x32xf32>
    %cst_121 = arith.constant 1.000000e+00 : f32
    %425 = vector.broadcast %cst_121 : f32 to vector<2x32xf32>
    %426 = arith.subf %425, %421 : vector<2x32xf32>
    %427 = arith.mulf %426, %424 : vector<2x32xf32>
    %428 = arith.mulf %421, %403 : vector<2x32xf32>
    %429 = arith.addf %427, %428 : vector<2x32xf32>
    %c30 = arith.constant 30 : index
    %c0_122 = arith.constant 0 : index
    %430 = vector.load %arg8[%c30, %c0_122] : memref<32x32xf32, #tpu.memory_space<vmem>>, vector<2x32xf32>
    tpu.vector_store %arg8[%c30, %c0_122], %429 {strides = array<i32>} : memref<32x32xf32, #tpu.memory_space<vmem>>, vector<2x32xf32>,
    %c0_123 = arith.constant 0 : index
    %c0_124 = arith.constant 0 : index
    %431 = vector.load %arg8[%c0_123, %c0_124] : memref<32x32xf32, #tpu.memory_space<vmem>>, vector<32x32xf32>
    %c0_125 = arith.constant 0 : index
    %c0_126 = arith.constant 0 : index
    %432 = vector.load %arg5[%c0_125, %c0_126] : memref<32x128xf32, #tpu.memory_space<vmem>>, vector<32x128xf32>
    %cst_127 = arith.constant dense<0.000000e+00> : vector<32x128xf32>
    %433 = tpu.matmul %431, %432, %cst_127 {dimension_numbers = #tpu.dot_dimension_numbers<[1], [0], [0], [1], [0, 0, 1, 1], [], []>} : vector<32x32xf32>, vector<32x128xf32>, vector<32x128xf32> -> vector<32x128xf32>
    %c0_128 = arith.constant 0 : index
    %c0_129 = arith.constant 0 : index
    %434 = vector.load %arg6[%c0_128, %c0_129] : memref<1x128xf32, #tpu.memory_space<vmem>>, vector<1x128xf32>
    %435 = vector.broadcast %434 : vector<1x128xf32> to vector<32x128xf32>
    %436 = arith.addf %433, %435 : vector<32x128xf32>
    %437 = arith.negf %436 : vector<32x128xf32>
    %438 = math.exp %437 : vector<32x128xf32>
    %cst_130 = arith.constant 1.000000e+00 : f32
    %439 = vector.broadcast %cst_130 : f32 to vector<32x128xf32>
    %440 = arith.addf %439, %438 : vector<32x128xf32>
    %441 = arith.divf %439, %440 : vector<32x128xf32>
    %c0_131 = arith.constant 0 : index
    %c0_132 = arith.constant 0 : index
    %442 = vector.load %arg7[%c0_131, %c0_132] : memref<32x128xf32, #tpu.memory_space<vmem>>, vector<32x128xf32>
    tpu.vector_store %arg7[%c0_131, %c0_132], %441 {strides = array<i32>} : memref<32x128xf32, #tpu.memory_space<vmem>>, vector<32x128xf32>,
    return
  }
}

</mosaic_0001>

<bundles_post_ra>
// kernel: tpu_custom_call.1
= control target key start
LH: loop header
LB: loop body
LE: loop exit
PB: predicated region body
PF: predicated region fallthrough
CT: control target
= control target key end

     0   :  { %12 = vsyncpa [#allocation4], 0  ;;  %s6519_s0 = inlined_call_operand.hbm [shape: f32[2,8], index: 0, kind: input, shape index: {}]   ;;  %s6520_s1 = inlined_call_operand.hbm [shape: f32[8,96], index: 1, kind: input, shape index: {}]   ;;  %s6521_s2 = inlined_call_operand.hbm [shape: f32[32,96], index: 2, kind: input, shape index: {}]   ;;  %s6522_s3 = inlined_call_operand.vmem [shape: f32[1,96], index: 3, kind: input, shape index: {}]   ;;  %s6523_s4 = inlined_call_operand.vmem [shape: f32[1,32], index: 4, kind: input, shape index: {}]   ;;  %s6524_s5 = inlined_call_operand.hbm [shape: f32[32,128], index: 5, kind: input, shape index: {}]   ;;  %s6525_s6 = inlined_call_operand.vmem [shape: f32[1,128], index: 6, kind: input, shape index: {}]   ;;  %s6526_s7 = inlined_call_operand.hbm [shape: f32[32,128], index: 7, kind: output, shape index: {}]  }
   0x1   :  { %13 = vsyncpa [#allocation7], 0 }
   0x2   :  { %14 = vsyncpa [#allocation10], 0 }
   0x3   :  { %15 = vsyncpa [#allocation5], 0  ;;  %s5872_s24 = smov [#allocation6]   ;;  %s5873_s26 = smov [#allocation3]  }
   0x4   :  { %s32_s25 = sshll.u32 %s5872_s24, 4  ;;  %s22_s27 = sshll.u32 %s5873_s26, 4  ;;  %s33_s25 = int_to_ptr.vmem [resolvable:$true] %s32_s25  ;;  %s23_s27 = int_to_ptr.vmem [resolvable:$true] %s22_s27 }
   0x5   :  { %s5754_s30 = scalar_lea.hbm %s6520_s1, 128 }
   0x6   :  { %p5755_p0 = scmp.ne.s32.totalorder %s6520_s1, %s5754_s30  ;;  %p5758_p1 = scmp.lt.u32.totalorder %s5754_s30, %s6520_s1 }
   0x8   :  { %p5760_p2 = pnand %p5758_p1, %p5755_p0 }
   0xa   :  { %5763 = shalt.err (!%p5760_p2)
}
   0xb   :  { %s5764_s12 = scalar_lea.vmem %s33_s25, 128  ;;  %p5769_p4 = scmp.lt.s32.totalorder %s33_s25, %s33_s25 }
   0xc   :  { %p5765_p3 = scmp.ne.s32.totalorder %s33_s25, %s5764_s12  ;;  %p5770_p5 = scmp.lt.s32.totalorder %s5764_s12, %s5764_s12 }
   0xe   :  { %p5771_p6 = por %p5770_p5, %p5769_p4 }
  0x10   :  { %p5772_p7 = pnand %p5771_p6, %p5765_p3 }
  0x12   :  { %5775 = shalt.err (!%p5772_p7)
}
  0x13   :  { %35 = dma.hbm_to_vmem [thread:$0]  %s6520_s1, 128, %s33_s25, [#allocation7]  }
  0x14   :  { %s5776_s17 = scalar_lea.hbm %s6519_s0, 32 }
  0x15   :  { %p5777_p8 = scmp.ne.s32.totalorder %s6519_s0, %s5776_s17  ;;  %p5780_p9 = scmp.lt.u32.totalorder %s5776_s17, %s6519_s0 }
  0x17   :  { %p5782_p10 = pnand %p5780_p9, %p5777_p8 }
  0x19   :  { %5785 = shalt.err (!%p5782_p10)
}
  0x1a   :  { %s5786_s22 = scalar_lea.vmem %s23_s27, 32  ;;  %p5791_p12 = scmp.lt.s32.totalorder %s23_s27, %s23_s27 }
  0x1b   :  { %p5787_p11 = scmp.ne.s32.totalorder %s23_s27, %s5786_s22  ;;  %p5792_p13 = scmp.lt.s32.totalorder %s5786_s22, %s5786_s22 }
  0x1d   :  { %p5793_p0 = por %p5792_p13, %p5791_p12 }
  0x1f   :  { %p5794_p1 = pnand %p5793_p0, %p5787_p11 }
  0x21   :  { %5797 = shalt.err (!%p5794_p1)
}
  0x22   :  { %25 = dma.hbm_to_vmem [thread:$0]  %s6519_s0, 32, %s23_s27, [#allocation4]  }
  0x23   :  { %s5874_s24 = smov [#allocation8]   ;;  %s5798_s29 = scalar_lea.hbm %s6521_s2, 512 }
  0x24   :  { %s41_s25 = sshll.u32 %s5874_s24, 4  ;;  %p5799_p2 = scmp.ne.s32.totalorder %s6521_s2, %s5798_s29  ;;  %s42_s25 = int_to_ptr.vmem [resolvable:$true] %s41_s25 }
  0x25   :  { %p5802_p3 = scmp.lt.u32.totalorder %s5798_s29, %s6521_s2 }
  0x27   :  { %p5804_p4 = pnand %p5802_p3, %p5799_p2 }
  0x29   :  { %5807 = shalt.err (!%p5804_p4)
}
  0x2a   :  { %s5808_s11 = scalar_lea.vmem %s42_s25, 512  ;;  %p5813_p6 = scmp.lt.s32.totalorder %s42_s25, %s42_s25 }
  0x2b   :  { %p5809_p5 = scmp.ne.s32.totalorder %s42_s25, %s5808_s11  ;;  %p5814_p7 = scmp.lt.s32.totalorder %s5808_s11, %s5808_s11 }
  0x2d   :  { %p5815_p8 = por %p5814_p7, %p5813_p6 }
  0x2f   :  { %p5816_p9 = pnand %p5815_p8, %p5809_p5 }
  0x31   :  { %5819 = shalt.err (!%p5816_p9)
}
  0x32   :  { %s5875_s0 = smov 128   ;;  %s5876_s27 = smov 8  }
  0x33   :  { %47 = dma.hbm_to_vmem [thread:$0]  %s6521_s2, 512, %s42_s25, [#allocation7], %s5875_s0, %s5875_s0, %s5876_s27  }
  0x34   :  { %s5877_s14 = smov [#allocation9]   ;;  %s5820_s18 = scalar_lea.hbm %s6524_s5, 512 }
  0x35   :  { %s57_s15 = sshll.u32 %s5877_s14, 4  ;;  %p5821_p10 = scmp.ne.s32.totalorder %s6524_s5, %s5820_s18  ;;  %s58_s15 = int_to_ptr.vmem [resolvable:$true] %s57_s15 }
  0x36   :  { %p5824_p11 = scmp.lt.u32.totalorder %s5820_s18, %s6524_s5 }
  0x38   :  { %p5826_p12 = pnand %p5824_p11, %p5821_p10 }
  0x3a   :  { %5829 = shalt.err (!%p5826_p12)
}
  0x3b   :  { %s5830_s1 = scalar_lea.vmem %s58_s15, 512  ;;  %p5835_p0 = scmp.lt.s32.totalorder %s58_s15, %s58_s15 }
  0x3c   :  { %p5831_p13 = scmp.ne.s32.totalorder %s58_s15, %s5830_s1  ;;  %p5836_p1 = scmp.lt.s32.totalorder %s5830_s1, %s5830_s1 }
  0x3e   :  { %p5837_p2 = por %p5836_p1, %p5835_p0 }
  0x40   :  { %p5838_p3 = pnand %p5837_p2, %p5831_p13 }
  0x42   :  { %5841 = shalt.err (!%p5838_p3)
}
  0x43   :  { %63 = dma.hbm_to_vmem [thread:$0]  %s6524_s5, 512, %s58_s15, [#allocation10], %s5875_s0, %s5875_s0, %s5876_s27  }
  0x44   :  { %5864 = dma.done.wait [#allocation4], 32  }
  0x45   :  { %5865 = vsyncadd [#allocation4], 4294967264 }
  0x46   :  { %5866 = dma.done.wait [#allocation7], 640  }
  0x47   :  { %5867 = vsyncadd [#allocation7], 4294966656 }
  0x48   :  { %5868 = dma.done.wait [#allocation10], 512  }
  0x49   :  { %5869 = vsyncadd [#allocation10], 4294966784  ;;  %v5878_v0 = vmov 0.0|0.0   ;;  %v5879_v1 = vmov 0.0   ;;  %vm5880_vm0 = vmmov 0   ;;  %v161_v2 = vld [vmem:[#allocation8] sm:$0xff] }
  0x4a   :  { %5248 = vmatprep.subr.bf16.mxu0 %v5878_v0  ;;  %4701 = vmatprep.subr.mxu1 %v5879_v1  ;;  %v162_v3 = vld [vmem:[#allocation8 + $0x8] sm:$0xff]  ;;  %v163_v4 = vld [vmem:[#allocation8 + $0x10] sm:$0xff]  ;;  %v164_v7 = vld [vmem:[#allocation8 + $0x18] sm:$0xff]  ;;  %vm87_vm1 = vcmask 64512   ;;  %s5881_s5 = smov 96   ;;  %s5882_s24 = smov 64  }
  0x4b   :  { %4703 = vmatprep.mubr.msk.f32.mxu1 %vm5880_vm0, %v5879_v1  ;;  %4714 = vmatprep.mubr.msk.f32.mxu0 %vm5880_vm0, %v5879_v1  ;;  %v5567_v5 = vpack.i.bf16 %v162_v3, %v161_v2  ;;  %v5985_v6 = vpack.c.bf16 %v162_v3, %v161_v2  ;;  %v79_v8 = vld [vmem:[#allocation6] sm:$0xff]  ;;  %v78_v9 = vld [vmem:[#allocation3] sm:$0x3]  ;;  %v5572_v10 = vpack.i.bf16 %v164_v7, %v163_v4  ;;  %vm451_vm2 = vcmask 254976  }
  0x4c   :  { %4702 = vmatpush3.msra.mxu1 %v79_v8  ;;  %v5989_v11 = vpack.c.bf16 %v164_v7, %v163_v4  ;;  %v4362_v32 = vld [vmem:[%s6522_s3] ss:$0 sm:$0xff]  ;;  %s5883_s3 = smov 32   ;;  %vm166_vm3 = vcmask 261120  }
  0x4d   :  { %5568 = vrot.lane.b32.xlu1 %v5567_v5, %s5881_s5  ;;  %5558 = vrot.lane.b32.xlu0 %v5567_v5, %s5882_s24  ;;  %v6042_v38 = vld [vmem:[%s6523_s4] ss:$0 sm:$0xff] }
  0x4e   :  { %5250 = vmatpush3.bf16.msra.mxu0 %v5985_v6  ;;  %4704 = vmatmul.mubr.msk.f32.vlgmr.msra.gmra.mrb[0].mxu1 %vm87_vm1, %v78_v9 }
  0x4f   :  { %5251 = vmatprep.subr.bf16.mxu0 %v5878_v0  ;;  %5260 = vmatprep.subr.bf16.mxu1 %v5878_v0 }
  0x50   :  { %4736 = vmatprep.mubr.msk.f32.mxu1 %vm5880_vm0, %v5879_v1 }
  0x51   :  { %5573 = vrot.lane.b32.xlu1 %v5572_v10, %s5881_s5  ;;  %5563 = vrot.lane.b32.xlu0 %v5572_v10, %s5882_s24 }
  0x52   :  { %5253 = vmatpush3.bf16.msra.mxu0 %v5989_v11 }
  0x53   :  { %5254 = vmatprep.subr.bf16.mxu0 %v5878_v0 }
  0x55   :  { %4715 = vmatmul.mubr.f32.vlgmr.msra.gmra.mrb[0].mxu0 %v5879_v1 }
  0x56   :  { %4725 = vmatprep.mubr.msk.f32.mxu0 %vm5880_vm0, %v5879_v1 }
  0xbf   :  { %v5569_v12 = vpop.permute.xlu1 %5568  ;;  %v5559_v13 = vpop.permute.xlu0 %5558 }
  0xc0   :  { %v5571_v14 = vunpack.i.h.bf16 %v5569_v12  ;;  %v5570_v15 = vunpack.i.l.bf16 %v5569_v12  ;;  %v5561_v16 = vunpack.i.h.bf16 %v5559_v13  ;;  %v5560_v17 = vunpack.i.l.bf16 %v5559_v13 }
  0xc2   :  { %v6003_v18 = vpack.c.bf16 %v5571_v14, %v5570_v15  ;;  %v6005_v19 = vpack.c.bf16 %v5561_v16, %v5560_v17 }
  0xc3   :  { %v5574_v20 = vpop.permute.xlu1 %5573  ;;  %v5564_v21 = vpop.permute.xlu0 %5563 }
  0xc4   :  { %v5576_v22 = vunpack.i.h.bf16 %v5574_v20  ;;  %v5575_v23 = vunpack.i.l.bf16 %v5574_v20  ;;  %v5566_v24 = vunpack.i.h.bf16 %v5564_v21  ;;  %v5565_v25 = vunpack.i.l.bf16 %v5564_v21  ;;  %5256 = vmatpush3.bf16.msra.mxu0 %v6003_v18  ;;  %5262 = vmatpush3.bf16.msra.mxu1 %v6005_v19 }
  0xc5   :  { %5257 = vmatprep.subr.bf16.mxu0 %v5878_v0  ;;  %5263 = vmatprep.subr.bf16.mxu1 %v5878_v0 }
  0xc6   :  { %v6011_v26 = vpack.c.bf16 %v5576_v22, %v5575_v23  ;;  %v6013_v27 = vpack.c.bf16 %v5566_v24, %v5565_v25 }
  0xc8   :  { %5259 = vmatpush3.bf16.msra.mxu0 %v6011_v26  ;;  %5265 = vmatpush3.bf16.msra.mxu1 %v6013_v27 }
  0xc9   :  { %5272 = vmatprep.subr.bf16.mxu1 %v5878_v0  ;;  %5266 = vmatprep.subr.bf16.mxu0 %v5878_v0 }
  0xcb   :  { %4726 = vmatmul.mubr.f32.vlgmr.msra.gmra.mrb[2].mxu0 %v5879_v1  ;;  %4737 = vmatmul.mubr.f32.vlgmr.msra.gmra.mrb[2].mxu1 %v5879_v1 }
  0xcc   :  { %5274 = vmatpush3.bf16.msra.mxu1 %v6003_v18  ;;  %5268 = vmatpush3.bf16.msra.mxu0 %v5985_v6 }
  0xcd   :  { %5275 = vmatprep.subr.bf16.mxu1 %v5878_v0  ;;  %5269 = vmatprep.subr.bf16.mxu0 %v5878_v0 }
  0xce   :  { %4747 = vmatprep.mubr.msk.f32.mxu0 %vm5880_vm0, %v5879_v1  ;;  %4758 = vmatprep.mubr.msk.f32.mxu1 %vm5880_vm0, %v5879_v1 }
  0xd0   :  { %5277 = vmatpush3.bf16.msra.mxu1 %v6011_v26  ;;  %5271 = vmatpush3.bf16.msra.mxu0 %v5989_v11 }
  0xd1   :  { %5278 = vmatprep.subr.bf16.mxu0 %v5878_v0  ;;  %5284 = vmatprep.subr.bf16.mxu1 %v5878_v0 }
 0x121   :  { %v157_v28 = vpop.f32.mrb[0].mxu1 }
 0x122   :  { %v4705_v29 = vpop.f32.mrb[1].mxu1  ;;  %v6036_v33 = vadd.f32 %v4362_v32, %v157_v28 }
 0x128   :  { %v236_v30 = vpop.f32.mrb[0].mxu0 }
 0x129   :  { %v4716_v31 = vpop.f32.mrb[1].mxu0  ;;  %v414_v34 = vadd.f32 %v236_v30, %v6036_v33 }
 0x12b   :  { %v4365_v35 = vmul.f32 -1.442695, %v414_v34 }
 0x12d   :  { %5577 = vpow2.f32 %v4365_v35 }
 0x137   :  { %v5578_v36 = vpop.eup %5577 }
 0x138   :  { %v418_v37 = vadd.f32 1.0, %v5578_v36 }
 0x13a   :  { %5579 = vrcp.f32 %v418_v37 }
 0x144   :  { %v5580_v39 = vpop.eup %5579 }
 0x19e   :  { %v322_v40 = vpop.f32.mrb[2].mxu0  ;;  %v410_v41 = vpop.f32.mrb[2].mxu1 }
 0x19f   :  { %v411_v42 = vadd.f32 %v6042_v38, %v410_v41  ;;  %422 = vrot.lane.b32.xlu1 %v322_v40, %s5883_s3  ;;  %v4738_v43 = vpop.f32.mrb[3].mxu1  ;;  %v4727_v44 = vpop.f32.mrb[3].mxu0 }
 0x1a1   :  { %v432_v45 = vmul.f32 %v5580_v39, %v411_v42 }
 0x1a3   :  { %434 = vrot.lane.b32.xlu0 %v432_v45, %s5882_s24 }
 0x211   :  { %v423_v49 = vpop.permute.xlu1 %422 }
 0x212   :  { %v425_v50 = vadd.f32 %v423_v49, %v6036_v33 }
 0x214   :  { %v4366_v51 = vmul.f32 -1.442695, %v425_v50 }
 0x215   :  { %v435_v46 = vpop.permute.xlu0 %434 }
 0x216   :  { %v437_v47 = vadd.f32 %v435_v46, %v6036_v33 }
 0x218   :  { %5581 = vtanh.f32 %v437_v47 }
 0x219   :  { %5583 = vpow2.f32 %v4366_v51 }
 0x222   :  { %v5582_v48 = vpop.eup %5581 }
 0x223   :  { %441 = vrot.lane.b32.xlu0 %v5582_v48, %s5881_s5  ;;  %v5584_v52 = vpop.eup %5583 }
 0x224   :  { %v429_v53 = vadd.f32 1.0, %v5584_v52 }
 0x226   :  { %5585 = vrcp.f32 %v429_v53 }
 0x230   :  { %v5586_v54 = vpop.eup %5585 }
 0x231   :  { %v439_v55 = vsub.f32 1.0, %v5586_v54  ;;  %v445_v57 = vmul.f32 0.0, %v5586_v54 }
 0x295   :  { %v442_v56 = vpop.permute.xlu0 %441 }
 0x296   :  { %v444_v58 = vmul.f32 %v442_v56, %v439_v55 }
 0x298   :  { %v446_v59 = vadd.f32 %v445_v57, %v444_v58 }
 0x29a   :  { %448 = vrot.lane.b32.xlu1 %v446_v59, %s5881_s5 }
 0x30c   :  { %v449_v60 = vpop.permute.xlu1 %448 }
 0x30d   :  { %452 = vst.msk [vmem:[#allocation2] sm:$0x3] %vm451_vm2, %v449_v60  ;;  %4748 = vmatmul.mubr.msk.f32.vlgmr.msra.gmra.mrb[4].mxu0 %vm166_vm3, %v449_v60  ;;  %4759 = vmatmul.mubr.msk.f32.vlgmr.msra.gmra.mrb[4].mxu1 %vm166_vm3, %v449_v60 }
 0x30e   :  { %5280 = vmatpush3.bf16.msra.mxu0 %v6005_v19  ;;  %4769 = vmatprep.mubr.msk.f32.mxu0 %vm5880_vm0, %v5879_v1 }
 0x30f   :  { %5281 = vmatprep.subr.bf16.mxu0 %v5878_v0  ;;  %5286 = vmatpush3.bf16.msra.mxu1 %v5985_v6 }
 0x310   :  { %5287 = vmatprep.subr.bf16.mxu1 %v5878_v0  ;;  %4780 = vmatprep.mubr.msk.f32.mxu1 %vm5880_vm0, %v5879_v1 }
 0x312   :  { %5283 = vmatpush3.bf16.msra.mxu0 %v6013_v27 }
 0x313   :  { %5290 = vmatprep.subr.bf16.mxu0 %v5878_v0  ;;  %5289 = vmatpush3.bf16.msra.mxu1 %v5989_v11 }
 0x314   :  { %5296 = vmatprep.subr.bf16.mxu1 %v5878_v0 }
 0x315   :  { %4770 = vmatmul.mubr.msk.f32.vlgmr.msra.gmra.mrb[6].mxu0 %vm166_vm3, %v449_v60 }
 0x316   :  { %5292 = vmatpush3.bf16.msra.mxu0 %v6003_v18  ;;  %4791 = vmatprep.mubr.msk.f32.mxu0 %vm5880_vm0, %v5879_v1 }
 0x317   :  { %5293 = vmatprep.subr.bf16.mxu0 %v5878_v0 }
 0x31a   :  { %5295 = vmatpush3.bf16.msra.mxu0 %v6011_v26 }
 0x31b   :  { %5302 = vmatprep.subr.bf16.mxu0 %v5878_v0 }
 0x3e0   :  { %v521_v61 = vpop.f32.mrb[4].mxu0  ;;  %v591_v62 = vpop.f32.mrb[4].mxu1 }
 0x3e1   :  { %v665_v63 = vadd.f32 %v521_v61, %v6036_v33  ;;  %v4749_v2 = vpop.f32.mrb[5].mxu0  ;;  %673 = vrot.lane.b32.xlu1 %v591_v62, %s5883_s3  ;;  %v4760_v3 = vpop.f32.mrb[5].mxu1 }
 0x3e3   :  { %v4370_v4 = vmul.f32 -1.442695, %v665_v63 }
 0x3e5   :  { %5587 = vpow2.f32 %v4370_v4 }
 0x3e8   :  { %v661_v5 = vpop.f32.mrb[6].mxu0 }
 0x3e9   :  { %v4771_v7 = vpop.f32.mrb[7].mxu0  ;;  %v662_v10 = vadd.f32 %v6042_v38, %v661_v5 }
 0x3ef   :  { %v5588_v8 = vpop.eup %5587 }
 0x3f0   :  { %v669_v9 = vadd.f32 1.0, %v5588_v8 }
 0x3f2   :  { %5589 = vrcp.f32 %v669_v9 }
 0x3fc   :  { %v5590_v12 = vpop.eup %5589 }
 0x3fd   :  { %v683_v13 = vmul.f32 %v5590_v12, %v662_v10 }
 0x3ff   :  { %685 = vrot.lane.b32.xlu0 %v683_v13, %s5882_s24 }
 0x453   :  { %v674_v17 = vpop.permute.xlu1 %673 }
 0x454   :  { %v676_v20 = vadd.f32 %v674_v17, %v6036_v33 }
 0x456   :  { %v4371_v21 = vmul.f32 -1.442695, %v676_v20 }
 0x471   :  { %v686_v14 = vpop.permute.xlu0 %685 }
 0x472   :  { %v688_v15 = vadd.f32 %v686_v14, %v6036_v33 }
 0x474   :  { %5591 = vtanh.f32 %v688_v15 }
 0x475   :  { %5593 = vpow2.f32 %v4371_v21 }
 0x47e   :  { %v5592_v16 = vpop.eup %5591 }
 0x47f   :  { %692 = vrot.lane.b32.xlu0 %v5592_v16, %s5881_s5  ;;  %v5594_v22 = vpop.eup %5593 }
 0x480   :  { %v680_v23 = vadd.f32 1.0, %v5594_v22 }
 0x482   :  { %5595 = vrcp.f32 %v680_v23 }
 0x48c   :  { %v5596_v24 = vpop.eup %5595 }
 0x48d   :  { %v690_v25 = vsub.f32 1.0, %v5596_v24  ;;  %v696_v30 = vmul.f32 %v5596_v24, %v446_v59 }
 0x4f1   :  { %v693_v28 = vpop.permute.xlu0 %692 }
 0x4f2   :  { %v695_v29 = vmul.f32 %v693_v28, %v690_v25 }
 0x4f4   :  { %v697_v31 = vadd.f32 %v696_v30, %v695_v29 }
 0x4f6   :  { %699 = vrot.lane.b32.xlu1 %v697_v31, %s5881_s5 }
 0x568   :  { %v700_v32 = vpop.permute.xlu1 %699 }
 0x569   :  { %702 = vst.msk [vmem:[#allocation2 + $0x2] sm:$0x3] %vm451_vm2, %v700_v32  ;;  %4781 = vmatmul.mubr.msk.f32.vlgmr.msra.gmra.mrb[6].mxu1 %vm166_vm3, %v700_v32  ;;  %4792 = vmatmul.mubr.msk.f32.vlgmr.msra.gmra.mrb[8].mxu0 %vm166_vm3, %v700_v32 }
 0x56a   :  { %5298 = vmatpush3.bf16.msra.mxu1 %v6005_v19  ;;  %4802 = vmatprep.mubr.msk.f32.mxu1 %vm5880_vm0, %v5879_v1 }
 0x56b   :  { %5299 = vmatprep.subr.bf16.mxu1 %v5878_v0  ;;  %5304 = vmatpush3.bf16.msra.mxu0 %v5985_v6 }
 0x56c   :  { %5305 = vmatprep.subr.bf16.mxu0 %v5878_v0  ;;  %4813 = vmatprep.mubr.msk.f32.mxu0 %vm5880_vm0, %v5879_v1 }
 0x56e   :  { %5301 = vmatpush3.bf16.msra.mxu1 %v6013_v27 }
 0x56f   :  { %5308 = vmatprep.subr.bf16.mxu1 %v5878_v0  ;;  %5307 = vmatpush3.bf16.msra.mxu0 %v5989_v11 }
 0x570   :  { %5314 = vmatprep.subr.bf16.mxu0 %v5878_v0 }
 0x571   :  { %4803 = vmatmul.mubr.msk.f32.vlgmr.msra.gmra.mrb[8].mxu1 %vm166_vm3, %v700_v32 }
 0x572   :  { %5310 = vmatpush3.bf16.msra.mxu1 %v6003_v18  ;;  %4824 = vmatprep.mubr.msk.f32.mxu1 %vm5880_vm0, %v5879_v1 }
 0x573   :  { %5311 = vmatprep.subr.bf16.mxu1 %v5878_v0 }
 0x576   :  { %5313 = vmatpush3.bf16.msra.mxu1 %v6011_v26 }
 0x577   :  { %5320 = vmatprep.subr.bf16.mxu1 %v5878_v0 }
 0x63c   :  { %v771_v34 = vpop.f32.mrb[6].mxu1  ;;  %v841_v35 = vpop.f32.mrb[8].mxu0 }
 0x63d   :  { %v915_v36 = vadd.f32 %v771_v34, %v6036_v33  ;;  %923 = vrot.lane.b32.xlu1 %v841_v35, %s5883_s3  ;;  %v4782_v37 = vpop.f32.mrb[7].mxu1  ;;  %v4793_v39 = vpop.f32.mrb[9].mxu0 }
 0x63f   :  { %v4375_v40 = vmul.f32 -1.442695, %v915_v36 }
 0x641   :  { %5597 = vpow2.f32 %v4375_v40 }
 0x644   :  { %v911_v41 = vpop.f32.mrb[8].mxu1 }
 0x645   :  { %v4804_v42 = vpop.f32.mrb[9].mxu1  ;;  %v912_v45 = vadd.f32 %v6042_v38, %v911_v41 }
 0x64b   :  { %v5598_v43 = vpop.eup %5597 }
 0x64c   :  { %v919_v44 = vadd.f32 1.0, %v5598_v43 }
 0x64e   :  { %5599 = vrcp.f32 %v919_v44 }
 0x658   :  { %v5600_v46 = vpop.eup %5599 }
 0x659   :  { %v933_v47 = vmul.f32 %v5600_v46, %v912_v45 }
 0x65b   :  { %935 = vrot.lane.b32.xlu0 %v933_v47, %s5882_s24 }
 0x6af   :  { %v924_v51 = vpop.permute.xlu1 %923 }
 0x6b0   :  { %v926_v52 = vadd.f32 %v924_v51, %v6036_v33 }
 0x6b2   :  { %v4376_v53 = vmul.f32 -1.442695, %v926_v52 }
 0x6cd   :  { %v936_v48 = vpop.permute.xlu0 %935 }
 0x6ce   :  { %v938_v49 = vadd.f32 %v936_v48, %v6036_v33 }
 0x6d0   :  { %5601 = vtanh.f32 %v938_v49 }
 0x6d1   :  { %5603 = vpow2.f32 %v4376_v53 }
 0x6da   :  { %v5602_v50 = vpop.eup %5601 }
 0x6db   :  { %942 = vrot.lane.b32.xlu0 %v5602_v50, %s5881_s5  ;;  %v5604_v54 = vpop.eup %5603 }
 0x6dc   :  { %v930_v55 = vadd.f32 1.0, %v5604_v54 }
 0x6de   :  { %5605 = vrcp.f32 %v930_v55 }
 0x6e8   :  { %v5606_v56 = vpop.eup %5605 }
 0x6e9   :  { %v940_v57 = vsub.f32 1.0, %v5606_v56  ;;  %v946_v59 = vmul.f32 %v5606_v56, %v697_v31 }
 0x74d   :  { %v943_v58 = vpop.permute.xlu0 %942 }
 0x74e   :  { %v945_v60 = vmul.f32 %v943_v58, %v940_v57 }
 0x750   :  { %v947_v61 = vadd.f32 %v946_v59, %v945_v60 }
 0x752   :  { %949 = vrot.lane.b32.xlu1 %v947_v61, %s5881_s5 }
 0x7c4   :  { %v950_v62 = vpop.permute.xlu1 %949 }
 0x7c5   :  { %952 = vst.msk [vmem:[#allocation2 + $0x4] sm:$0x3] %vm451_vm2, %v950_v62  ;;  %4814 = vmatmul.mubr.msk.f32.vlgmr.msra.gmra.mrb[10].mxu0 %vm166_vm3, %v950_v62  ;;  %4825 = vmatmul.mubr.msk.f32.vlgmr.msra.gmra.mrb[10].mxu1 %vm166_vm3, %v950_v62 }
 0x7c6   :  { %5316 = vmatpush3.bf16.msra.mxu0 %v6005_v19  ;;  %4835 = vmatprep.mubr.msk.f32.mxu0 %vm5880_vm0, %v5879_v1 }
 0x7c7   :  { %5317 = vmatprep.subr.bf16.mxu0 %v5878_v0  ;;  %5322 = vmatpush3.bf16.msra.mxu1 %v5985_v6 }
 0x7c8   :  { %5323 = vmatprep.subr.bf16.mxu1 %v5878_v0  ;;  %4846 = vmatprep.mubr.msk.f32.mxu1 %vm5880_vm0, %v5879_v1 }
 0x7ca   :  { %5319 = vmatpush3.bf16.msra.mxu0 %v6013_v27 }
 0x7cb   :  { %5326 = vmatprep.subr.bf16.mxu0 %v5878_v0  ;;  %5325 = vmatpush3.bf16.msra.mxu1 %v5989_v11 }
 0x7cc   :  { %5332 = vmatprep.subr.bf16.mxu1 %v5878_v0 }
 0x7cd   :  { %4836 = vmatmul.mubr.msk.f32.vlgmr.msra.gmra.mrb[12].mxu0 %vm166_vm3, %v950_v62 }
 0x7ce   :  { %5328 = vmatpush3.bf16.msra.mxu0 %v6003_v18  ;;  %4857 = vmatprep.mubr.msk.f32.mxu0 %vm5880_vm0, %v5879_v1 }
 0x7cf   :  { %5329 = vmatprep.subr.bf16.mxu0 %v5878_v0 }
 0x7d2   :  { %5331 = vmatpush3.bf16.msra.mxu0 %v6011_v26 }
 0x7d3   :  { %5338 = vmatprep.subr.bf16.mxu0 %v5878_v0 }
 0x898   :  { %v1021_v63 = vpop.f32.mrb[10].mxu0  ;;  %v1091_v2 = vpop.f32.mrb[10].mxu1 }
 0x899   :  { %v1165_v3 = vadd.f32 %v1021_v63, %v6036_v33  ;;  %v4815_v4 = vpop.f32.mrb[11].mxu0  ;;  %1173 = vrot.lane.b32.xlu1 %v1091_v2, %s5883_s3  ;;  %v4826_v5 = vpop.f32.mrb[11].mxu1 }
 0x89b   :  { %v4380_v7 = vmul.f32 -1.442695, %v1165_v3 }
 0x89d   :  { %5607 = vpow2.f32 %v4380_v7 }
 0x8a0   :  { %v1161_v8 = vpop.f32.mrb[12].mxu0 }
 0x8a1   :  { %v4837_v9 = vpop.f32.mrb[13].mxu0  ;;  %v1162_v13 = vadd.f32 %v6042_v38, %v1161_v8 }
 0x8a7   :  { %v5608_v10 = vpop.eup %5607 }
 0x8a8   :  { %v1169_v12 = vadd.f32 1.0, %v5608_v10 }
 0x8aa   :  { %5609 = vrcp.f32 %v1169_v12 }
 0x8b4   :  { %v5610_v14 = vpop.eup %5609 }
 0x8b5   :  { %v1183_v15 = vmul.f32 %v5610_v14, %v1162_v13 }
 0x8b7   :  { %1185 = vrot.lane.b32.xlu0 %v1183_v15, %s5882_s24 }
 0x90b   :  { %v1174_v21 = vpop.permute.xlu1 %1173 }
 0x90c   :  { %v1176_v22 = vadd.f32 %v1174_v21, %v6036_v33 }
 0x90e   :  { %v4381_v23 = vmul.f32 -1.442695, %v1176_v22 }
 0x929   :  { %v1186_v16 = vpop.permute.xlu0 %1185 }
 0x92a   :  { %v1188_v17 = vadd.f32 %v1186_v16, %v6036_v33 }
 0x92c   :  { %5611 = vtanh.f32 %v1188_v17 }
 0x92d   :  { %5613 = vpow2.f32 %v4381_v23 }
 0x936   :  { %v5612_v20 = vpop.eup %5611 }
 0x937   :  { %1192 = vrot.lane.b32.xlu0 %v5612_v20, %s5881_s5  ;;  %v5614_v24 = vpop.eup %5613 }
 0x938   :  { %v1180_v25 = vadd.f32 1.0, %v5614_v24 }
 0x93a   :  { %5615 = vrcp.f32 %v1180_v25 }
 0x944   :  { %v5616_v28 = vpop.eup %5615 }
 0x945   :  { %v1190_v29 = vsub.f32 1.0, %v5616_v28  ;;  %v1196_v32 = vmul.f32 %v5616_v28, %v947_v61 }
 0x9a9   :  { %v1193_v30 = vpop.permute.xlu0 %1192 }
 0x9aa   :  { %v1195_v31 = vmul.f32 %v1193_v30, %v1190_v29 }
 0x9ac   :  { %v1197_v34 = vadd.f32 %v1196_v32, %v1195_v31 }
 0x9ae   :  { %1199 = vrot.lane.b32.xlu1 %v1197_v34, %s5881_s5 }
 0xa20   :  { %v1200_v35 = vpop.permute.xlu1 %1199 }
 0xa21   :  { %1202 = vst.msk [vmem:[#allocation2 + $0x6] sm:$0x3] %vm451_vm2, %v1200_v35  ;;  %4847 = vmatmul.mubr.msk.f32.vlgmr.msra.gmra.mrb[12].mxu1 %vm166_vm3, %v1200_v35  ;;  %4858 = vmatmul.mubr.msk.f32.vlgmr.msra.gmra.mrb[14].mxu0 %vm166_vm3, %v1200_v35 }
 0xa22   :  { %5334 = vmatpush3.bf16.msra.mxu1 %v6005_v19  ;;  %4868 = vmatprep.mubr.msk.f32.mxu1 %vm5880_vm0, %v5879_v1 }
 0xa23   :  { %5335 = vmatprep.subr.bf16.mxu1 %v5878_v0  ;;  %5340 = vmatpush3.bf16.msra.mxu0 %v5985_v6 }
 0xa24   :  { %5341 = vmatprep.subr.bf16.mxu0 %v5878_v0  ;;  %4879 = vmatprep.mubr.msk.f32.mxu0 %vm5880_vm0, %v5879_v1 }
 0xa26   :  { %5337 = vmatpush3.bf16.msra.mxu1 %v6013_v27 }
 0xa27   :  { %5344 = vmatprep.subr.bf16.mxu1 %v5878_v0  ;;  %5343 = vmatpush3.bf16.msra.mxu0 %v5989_v11 }
 0xa28   :  { %5350 = vmatprep.subr.bf16.mxu0 %v5878_v0 }
 0xa29   :  { %4869 = vmatmul.mubr.msk.f32.vlgmr.msra.gmra.mrb[14].mxu1 %vm166_vm3, %v1200_v35 }
 0xa2a   :  { %5346 = vmatpush3.bf16.msra.mxu1 %v6003_v18  ;;  %4890 = vmatprep.mubr.msk.f32.mxu1 %vm5880_vm0, %v5879_v1 }
 0xa2b   :  { %5347 = vmatprep.subr.bf16.mxu1 %v5878_v0 }
 0xa2e   :  { %5349 = vmatpush3.bf16.msra.mxu1 %v6011_v26 }
 0xa2f   :  { %5356 = vmatprep.subr.bf16.mxu1 %v5878_v0 }
 0xaf4   :  { %v1271_v36 = vpop.f32.mrb[12].mxu1  ;;  %v1341_v37 = vpop.f32.mrb[14].mxu0 }
 0xaf5   :  { %v1415_v39 = vadd.f32 %v1271_v36, %v6036_v33  ;;  %1423 = vrot.lane.b32.xlu1 %v1341_v37, %s5883_s3  ;;  %v4848_v40 = vpop.f32.mrb[13].mxu1  ;;  %v4859_v41 = vpop.f32.mrb[15].mxu0 }
 0xaf7   :  { %v4385_v42 = vmul.f32 -1.442695, %v1415_v39 }
 0xaf9   :  { %5617 = vpow2.f32 %v4385_v42 }
 0xafc   :  { %v1411_v43 = vpop.f32.mrb[14].mxu1 }
 0xafd   :  { %v4870_v44 = vpop.f32.mrb[15].mxu1  ;;  %v1412_v47 = vadd.f32 %v6042_v38, %v1411_v43 }
 0xb03   :  { %v5618_v45 = vpop.eup %5617 }
 0xb04   :  { %v1419_v46 = vadd.f32 1.0, %v5618_v45 }
 0xb06   :  { %5619 = vrcp.f32 %v1419_v46 }
 0xb10   :  { %v5620_v48 = vpop.eup %5619 }
 0xb11   :  { %v1433_v49 = vmul.f32 %v5620_v48, %v1412_v47 }
 0xb13   :  { %1435 = vrot.lane.b32.xlu0 %v1433_v49, %s5882_s24 }
 0xb67   :  { %v1424_v53 = vpop.permute.xlu1 %1423 }
 0xb68   :  { %v1426_v54 = vadd.f32 %v1424_v53, %v6036_v33 }
 0xb6a   :  { %v4386_v55 = vmul.f32 -1.442695, %v1426_v54 }
 0xb85   :  { %v1436_v50 = vpop.permute.xlu0 %1435 }
 0xb86   :  { %v1438_v51 = vadd.f32 %v1436_v50, %v6036_v33 }
 0xb88   :  { %5621 = vtanh.f32 %v1438_v51 }
 0xb89   :  { %5623 = vpow2.f32 %v4386_v55 }
 0xb92   :  { %v5622_v52 = vpop.eup %5621 }
 0xb93   :  { %1442 = vrot.lane.b32.xlu0 %v5622_v52, %s5881_s5  ;;  %v5624_v56 = vpop.eup %5623 }
 0xb94   :  { %v1430_v57 = vadd.f32 1.0, %v5624_v56 }
 0xb96   :  { %5625 = vrcp.f32 %v1430_v57 }
 0xba0   :  { %v5626_v58 = vpop.eup %5625 }
 0xba1   :  { %v1440_v59 = vsub.f32 1.0, %v5626_v58  ;;  %v1446_v61 = vmul.f32 %v5626_v58, %v1197_v34 }
 0xc05   :  { %v1443_v60 = vpop.permute.xlu0 %1442 }
 0xc06   :  { %v1445_v62 = vmul.f32 %v1443_v60, %v1440_v59 }
 0xc08   :  { %v1447_v63 = vadd.f32 %v1446_v61, %v1445_v62 }
 0xc0a   :  { %1449 = vrot.lane.b32.xlu1 %v1447_v63, %s5881_s5 }
 0xc7c   :  { %v1450_v2 = vpop.permute.xlu1 %1449 }
 0xc7d   :  { %1452 = vst.msk [vmem:[#allocation2 + $0x8] sm:$0x3] %vm451_vm2, %v1450_v2  ;;  %4880 = vmatmul.mubr.msk.f32.vlgmr.msra.gmra.mrb[16].mxu0 %vm166_vm3, %v1450_v2  ;;  %4891 = vmatmul.mubr.msk.f32.vlgmr.msra.gmra.mrb[16].mxu1 %vm166_vm3, %v1450_v2 }
 0xc7e   :  { %5352 = vmatpush3.bf16.msra.mxu0 %v6005_v19  ;;  %4901 = vmatprep.mubr.msk.f32.mxu0 %vm5880_vm0, %v5879_v1 }
 0xc7f   :  { %5353 = vmatprep.subr.bf16.mxu0 %v5878_v0  ;;  %5358 = vmatpush3.bf16.msra.mxu1 %v5985_v6 }
 0xc80   :  { %5359 = vmatprep.subr.bf16.mxu1 %v5878_v0  ;;  %4912 = vmatprep.mubr.msk.f32.mxu1 %vm5880_vm0, %v5879_v1 }
 0xc82   :  { %5355 = vmatpush3.bf16.msra.mxu0 %v6013_v27 }
 0xc83   :  { %5362 = vmatprep.subr.bf16.mxu0 %v5878_v0  ;;  %5361 = vmatpush3.bf16.msra.mxu1 %v5989_v11 }
 0xc84   :  { %5368 = vmatprep.subr.bf16.mxu1 %v5878_v0 }
 0xc85   :  { %4902 = vmatmul.mubr.msk.f32.vlgmr.msra.gmra.mrb[18].mxu0 %vm166_vm3, %v1450_v2 }
 0xc86   :  { %5364 = vmatpush3.bf16.msra.mxu0 %v6003_v18  ;;  %4923 = vmatprep.mubr.msk.f32.mxu0 %vm5880_vm0, %v5879_v1 }
 0xc87   :  { %5365 = vmatprep.subr.bf16.mxu0 %v5878_v0 }
 0xc8a   :  { %5367 = vmatpush3.bf16.msra.mxu0 %v6011_v26 }
 0xc8b   :  { %5374 = vmatprep.subr.bf16.mxu0 %v5878_v0 }
 0xd50   :  { %v1521_v3 = vpop.f32.mrb[16].mxu0  ;;  %v1591_v4 = vpop.f32.mrb[16].mxu1 }
 0xd51   :  { %v1665_v5 = vadd.f32 %v1521_v3, %v6036_v33  ;;  %v4881_v7 = vpop.f32.mrb[17].mxu0  ;;  %1673 = vrot.lane.b32.xlu1 %v1591_v4, %s5883_s3  ;;  %v4892_v8 = vpop.f32.mrb[17].mxu1 }
 0xd53   :  { %v4390_v9 = vmul.f32 -1.442695, %v1665_v5 }
 0xd55   :  { %5627 = vpow2.f32 %v4390_v9 }
 0xd58   :  { %v1661_v10 = vpop.f32.mrb[18].mxu0 }
 0xd59   :  { %v4903_v12 = vpop.f32.mrb[19].mxu0  ;;  %v1662_v15 = vadd.f32 %v6042_v38, %v1661_v10 }
 0xd5f   :  { %v5628_v13 = vpop.eup %5627 }
 0xd60   :  { %v1669_v14 = vadd.f32 1.0, %v5628_v13 }
 0xd62   :  { %5629 = vrcp.f32 %v1669_v14 }
 0xd6c   :  { %v5630_v16 = vpop.eup %5629 }
 0xd6d   :  { %v1683_v17 = vmul.f32 %v5630_v16, %v1662_v15 }
 0xd6f   :  { %1685 = vrot.lane.b32.xlu0 %v1683_v17, %s5882_s24 }
 0xdc3   :  { %v1674_v23 = vpop.permute.xlu1 %1673 }
 0xdc4   :  { %v1676_v24 = vadd.f32 %v1674_v23, %v6036_v33 }
 0xdc6   :  { %v4391_v25 = vmul.f32 -1.442695, %v1676_v24 }
 0xde1   :  { %v1686_v20 = vpop.permute.xlu0 %1685 }
 0xde2   :  { %v1688_v21 = vadd.f32 %v1686_v20, %v6036_v33 }
 0xde4   :  { %5631 = vtanh.f32 %v1688_v21 }
 0xde5   :  { %5633 = vpow2.f32 %v4391_v25 }
 0xdee   :  { %v5632_v22 = vpop.eup %5631 }
 0xdef   :  { %1692 = vrot.lane.b32.xlu0 %v5632_v22, %s5881_s5  ;;  %v5634_v28 = vpop.eup %5633 }
 0xdf0   :  { %v1680_v29 = vadd.f32 1.0, %v5634_v28 }
 0xdf2   :  { %5635 = vrcp.f32 %v1680_v29 }
 0xdfc   :  { %v5636_v30 = vpop.eup %5635 }
 0xdfd   :  { %v1690_v31 = vsub.f32 1.0, %v5636_v30  ;;  %v1696_v35 = vmul.f32 %v5636_v30, %v1447_v63 }
 0xe61   :  { %v1693_v32 = vpop.permute.xlu0 %1692 }
 0xe62   :  { %v1695_v34 = vmul.f32 %v1693_v32, %v1690_v31 }
 0xe64   :  { %v1697_v36 = vadd.f32 %v1696_v35, %v1695_v34 }
 0xe66   :  { %1699 = vrot.lane.b32.xlu1 %v1697_v36, %s5881_s5 }
 0xed8   :  { %v1700_v37 = vpop.permute.xlu1 %1699 }
 0xed9   :  { %1702 = vst.msk [vmem:[#allocation2 + $0xa] sm:$0x3] %vm451_vm2, %v1700_v37  ;;  %4913 = vmatmul.mubr.msk.f32.vlgmr.msra.gmra.mrb[18].mxu1 %vm166_vm3, %v1700_v37  ;;  %4924 = vmatmul.mubr.msk.f32.vlgmr.msra.gmra.mrb[20].mxu0 %vm166_vm3, %v1700_v37 }
 0xeda   :  { %5370 = vmatpush3.bf16.msra.mxu1 %v6005_v19  ;;  %4934 = vmatprep.mubr.msk.f32.mxu1 %vm5880_vm0, %v5879_v1 }
 0xedb   :  { %5371 = vmatprep.subr.bf16.mxu1 %v5878_v0  ;;  %5376 = vmatpush3.bf16.msra.mxu0 %v5985_v6 }
 0xedc   :  { %5377 = vmatprep.subr.bf16.mxu0 %v5878_v0  ;;  %4945 = vmatprep.mubr.msk.f32.mxu0 %vm5880_vm0, %v5879_v1 }
 0xede   :  { %5373 = vmatpush3.bf16.msra.mxu1 %v6013_v27 }
 0xedf   :  { %5380 = vmatprep.subr.bf16.mxu1 %v5878_v0  ;;  %5379 = vmatpush3.bf16.msra.mxu0 %v5989_v11 }
 0xee0   :  { %5386 = vmatprep.subr.bf16.mxu0 %v5878_v0 }
 0xee1   :  { %4935 = vmatmul.mubr.msk.f32.vlgmr.msra.gmra.mrb[20].mxu1 %vm166_vm3, %v1700_v37 }
 0xee2   :  { %5382 = vmatpush3.bf16.msra.mxu1 %v6003_v18  ;;  %4956 = vmatprep.mubr.msk.f32.mxu1 %vm5880_vm0, %v5879_v1 }
 0xee3   :  { %5383 = vmatprep.subr.bf16.mxu1 %v5878_v0 }
 0xee6   :  { %5385 = vmatpush3.bf16.msra.mxu1 %v6011_v26 }
 0xee7   :  { %5392 = vmatprep.subr.bf16.mxu1 %v5878_v0 }
 0xfac   :  { %v1771_v39 = vpop.f32.mrb[18].mxu1  ;;  %v1841_v40 = vpop.f32.mrb[20].mxu0 }
 0xfad   :  { %v1915_v41 = vadd.f32 %v1771_v39, %v6036_v33  ;;  %1923 = vrot.lane.b32.xlu1 %v1841_v40, %s5883_s3  ;;  %v4914_v42 = vpop.f32.mrb[19].mxu1  ;;  %v4925_v43 = vpop.f32.mrb[21].mxu0 }
 0xfaf   :  { %v4395_v44 = vmul.f32 -1.442695, %v1915_v41 }
 0xfb1   :  { %5637 = vpow2.f32 %v4395_v44 }
 0xfb4   :  { %v1911_v45 = vpop.f32.mrb[20].mxu1 }
 0xfb5   :  { %v4936_v46 = vpop.f32.mrb[21].mxu1  ;;  %v1912_v49 = vadd.f32 %v6042_v38, %v1911_v45 }
 0xfbb   :  { %v5638_v47 = vpop.eup %5637 }
 0xfbc   :  { %v1919_v48 = vadd.f32 1.0, %v5638_v47 }
 0xfbe   :  { %5639 = vrcp.f32 %v1919_v48 }
 0xfc8   :  { %v5640_v50 = vpop.eup %5639 }
 0xfc9   :  { %v1933_v51 = vmul.f32 %v5640_v50, %v1912_v49 }
 0xfcb   :  { %1935 = vrot.lane.b32.xlu0 %v1933_v51, %s5882_s24 }
0x101f   :  { %v1924_v55 = vpop.permute.xlu1 %1923 }
0x1020   :  { %v1926_v56 = vadd.f32 %v1924_v55, %v6036_v33 }
0x1022   :  { %v4396_v57 = vmul.f32 -1.442695, %v1926_v56 }
0x103d   :  { %v1936_v52 = vpop.permute.xlu0 %1935 }
0x103e   :  { %v1938_v53 = vadd.f32 %v1936_v52, %v6036_v33 }
0x1040   :  { %5641 = vtanh.f32 %v1938_v53 }
0x1041   :  { %5643 = vpow2.f32 %v4396_v57 }
0x104a   :  { %v5642_v54 = vpop.eup %5641 }
0x104b   :  { %1942 = vrot.lane.b32.xlu0 %v5642_v54, %s5881_s5  ;;  %v5644_v58 = vpop.eup %5643 }
0x104c   :  { %v1930_v59 = vadd.f32 1.0, %v5644_v58 }
0x104e   :  { %5645 = vrcp.f32 %v1930_v59 }
0x1058   :  { %v5646_v60 = vpop.eup %5645 }
0x1059   :  { %v1940_v61 = vsub.f32 1.0, %v5646_v60  ;;  %v1946_v63 = vmul.f32 %v5646_v60, %v1697_v36 }
0x10bd   :  { %v1943_v62 = vpop.permute.xlu0 %1942 }
0x10be   :  { %v1945_v2 = vmul.f32 %v1943_v62, %v1940_v61 }
0x10c0   :  { %v1947_v3 = vadd.f32 %v1946_v63, %v1945_v2 }
0x10c2   :  { %1949 = vrot.lane.b32.xlu1 %v1947_v3, %s5881_s5 }
0x1134   :  { %v1950_v4 = vpop.permute.xlu1 %1949 }
0x1135   :  { %1952 = vst.msk [vmem:[#allocation2 + $0xc] sm:$0x3] %vm451_vm2, %v1950_v4  ;;  %4946 = vmatmul.mubr.msk.f32.vlgmr.msra.gmra.mrb[22].mxu0 %vm166_vm3, %v1950_v4  ;;  %4957 = vmatmul.mubr.msk.f32.vlgmr.msra.gmra.mrb[22].mxu1 %vm166_vm3, %v1950_v4 }
0x1136   :  { %5388 = vmatpush3.bf16.msra.mxu0 %v6005_v19  ;;  %4967 = vmatprep.mubr.msk.f32.mxu0 %vm5880_vm0, %v5879_v1 }
0x1137   :  { %5389 = vmatprep.subr.bf16.mxu0 %v5878_v0  ;;  %5394 = vmatpush3.bf16.msra.mxu1 %v5985_v6 }
0x1138   :  { %5395 = vmatprep.subr.bf16.mxu1 %v5878_v0  ;;  %4978 = vmatprep.mubr.msk.f32.mxu1 %vm5880_vm0, %v5879_v1 }
0x113a   :  { %5391 = vmatpush3.bf16.msra.mxu0 %v6013_v27 }
0x113b   :  { %5398 = vmatprep.subr.bf16.mxu0 %v5878_v0  ;;  %5397 = vmatpush3.bf16.msra.mxu1 %v5989_v11 }
0x113c   :  { %5404 = vmatprep.subr.bf16.mxu1 %v5878_v0 }
0x113d   :  { %4968 = vmatmul.mubr.msk.f32.vlgmr.msra.gmra.mrb[24].mxu0 %vm166_vm3, %v1950_v4 }
0x113e   :  { %5400 = vmatpush3.bf16.msra.mxu0 %v6003_v18  ;;  %4989 = vmatprep.mubr.msk.f32.mxu0 %vm5880_vm0, %v5879_v1 }
0x113f   :  { %5401 = vmatprep.subr.bf16.mxu0 %v5878_v0 }
0x1142   :  { %5403 = vmatpush3.bf16.msra.mxu0 %v6011_v26 }
0x1143   :  { %5410 = vmatprep.subr.bf16.mxu0 %v5878_v0 }
0x1208   :  { %v2021_v5 = vpop.f32.mrb[22].mxu0  ;;  %v2091_v7 = vpop.f32.mrb[22].mxu1 }
0x1209   :  { %v2165_v8 = vadd.f32 %v2021_v5, %v6036_v33  ;;  %v4947_v9 = vpop.f32.mrb[23].mxu0  ;;  %2173 = vrot.lane.b32.xlu1 %v2091_v7, %s5883_s3  ;;  %v4958_v10 = vpop.f32.mrb[23].mxu1 }
0x120b   :  { %v4400_v12 = vmul.f32 -1.442695, %v2165_v8 }
0x120d   :  { %5647 = vpow2.f32 %v4400_v12 }
0x1210   :  { %v2161_v13 = vpop.f32.mrb[24].mxu0 }
0x1211   :  { %v4969_v14 = vpop.f32.mrb[25].mxu0  ;;  %v2162_v17 = vadd.f32 %v6042_v38, %v2161_v13 }
0x1217   :  { %v5648_v15 = vpop.eup %5647 }
0x1218   :  { %v2169_v16 = vadd.f32 1.0, %v5648_v15 }
0x121a   :  { %5649 = vrcp.f32 %v2169_v16 }
0x1224   :  { %v5650_v20 = vpop.eup %5649 }
0x1225   :  { %v2183_v21 = vmul.f32 %v5650_v20, %v2162_v17  ;;  %v6318_v20 = vld [vmem:[%s6523_s4] ss:$0 sm:$0xff] }
0x1227   :  { %2185 = vrot.lane.b32.xlu0 %v2183_v21, %s5882_s24 }
0x127b   :  { %v2174_v25 = vpop.permute.xlu1 %2173 }
0x127c   :  { %v2176_v28 = vadd.f32 %v2174_v25, %v6036_v33 }
0x127e   :  { %v4401_v29 = vmul.f32 -1.442695, %v2176_v28 }
0x1299   :  { %v2186_v22 = vpop.permute.xlu0 %2185 }
0x129a   :  { %v2188_v23 = vadd.f32 %v2186_v22, %v6036_v33 }
0x129c   :  { %5651 = vtanh.f32 %v2188_v23 }
0x129d   :  { %5653 = vpow2.f32 %v4401_v29 }
0x12a6   :  { %v5652_v24 = vpop.eup %5651 }
0x12a7   :  { %2192 = vrot.lane.b32.xlu0 %v5652_v24, %s5881_s5  ;;  %v5654_v30 = vpop.eup %5653 }
0x12a8   :  { %v2180_v31 = vadd.f32 1.0, %v5654_v30 }
0x12aa   :  { %5655 = vrcp.f32 %v2180_v31 }
0x12b4   :  { %v5656_v32 = vpop.eup %5655 }
0x12b5   :  { %v2190_v34 = vsub.f32 1.0, %v5656_v32  ;;  %v2196_v37 = vmul.f32 %v5656_v32, %v1947_v3 }
0x1319   :  { %v2193_v35 = vpop.permute.xlu0 %2192 }
0x131a   :  { %v2195_v36 = vmul.f32 %v2193_v35, %v2190_v34 }
0x131c   :  { %v2197_v39 = vadd.f32 %v2196_v37, %v2195_v36 }
0x131e   :  { %2199 = vrot.lane.b32.xlu1 %v2197_v39, %s5881_s5 }
0x1390   :  { %v2200_v40 = vpop.permute.xlu1 %2199 }
0x1391   :  { %2202 = vst.msk [vmem:[#allocation2 + $0xe] sm:$0x3] %vm451_vm2, %v2200_v40  ;;  %4979 = vmatmul.mubr.msk.f32.vlgmr.msra.gmra.mrb[24].mxu1 %vm166_vm3, %v2200_v40  ;;  %4990 = vmatmul.mubr.msk.f32.vlgmr.msra.gmra.mrb[26].mxu0 %vm166_vm3, %v2200_v40 }
0x1392   :  { %5406 = vmatpush3.bf16.msra.mxu1 %v6005_v19  ;;  %5000 = vmatprep.mubr.msk.f32.mxu1 %vm5880_vm0, %v5879_v1 }
0x1393   :  { %5407 = vmatprep.subr.bf16.mxu1 %v5878_v0  ;;  %5412 = vmatpush3.bf16.msra.mxu0 %v5985_v6 }
0x1394   :  { %5413 = vmatprep.subr.bf16.mxu0 %v5878_v0  ;;  %5011 = vmatprep.mubr.msk.f32.mxu0 %vm5880_vm0, %v5879_v1 }
0x1396   :  { %5409 = vmatpush3.bf16.msra.mxu1 %v6013_v27 }
0x1397   :  { %5416 = vmatprep.subr.bf16.mxu1 %v5878_v0  ;;  %5415 = vmatpush3.bf16.msra.mxu0 %v5989_v11 }
0x1398   :  { %5422 = vmatprep.subr.bf16.mxu0 %v5878_v0 }
0x1399   :  { %5001 = vmatmul.mubr.msk.f32.vlgmr.msra.gmra.mrb[26].mxu1 %vm166_vm3, %v2200_v40 }
0x139a   :  { %5418 = vmatpush3.bf16.msra.mxu1 %v6003_v18  ;;  %5022 = vmatprep.mubr.msk.f32.mxu1 %vm5880_vm0, %v5879_v1 }
0x139b   :  { %5419 = vmatprep.subr.bf16.mxu1 %v5878_v0 }
0x139e   :  { %5421 = vmatpush3.bf16.msra.mxu1 %v6011_v26 }
0x139f   :  { %5428 = vmatprep.subr.bf16.mxu1 %v5878_v0 }
0x1464   :  { %v2271_v41 = vpop.f32.mrb[24].mxu1  ;;  %v2341_v42 = vpop.f32.mrb[26].mxu0 }
0x1465   :  { %v2415_v43 = vadd.f32 %v2271_v41, %v6036_v33  ;;  %2423 = vrot.lane.b32.xlu1 %v2341_v42, %s5883_s3  ;;  %v4980_v44 = vpop.f32.mrb[25].mxu1  ;;  %v4991_v45 = vpop.f32.mrb[27].mxu0 }
0x1467   :  { %v4405_v46 = vmul.f32 -1.442695, %v2415_v43 }
0x1469   :  { %5657 = vpow2.f32 %v4405_v46 }
0x146c   :  { %v2411_v47 = vpop.f32.mrb[26].mxu1 }
0x146d   :  { %v5002_v48 = vpop.f32.mrb[27].mxu1  ;;  %v2412_v51 = vadd.f32 %v6042_v38, %v2411_v47 }
0x1473   :  { %v5658_v49 = vpop.eup %5657 }
0x1474   :  { %v2419_v50 = vadd.f32 1.0, %v5658_v49 }
0x1476   :  { %5659 = vrcp.f32 %v2419_v50 }
0x1480   :  { %v5660_v52 = vpop.eup %5659 }
0x1481   :  { %v2433_v53 = vmul.f32 %v5660_v52, %v2412_v51 }
0x1483   :  { %2435 = vrot.lane.b32.xlu0 %v2433_v53, %s5882_s24 }
0x14d7   :  { %v2424_v57 = vpop.permute.xlu1 %2423 }
0x14d8   :  { %v2426_v58 = vadd.f32 %v2424_v57, %v6036_v33 }
0x14da   :  { %v4406_v59 = vmul.f32 -1.442695, %v2426_v58 }
0x14f5   :  { %v2436_v54 = vpop.permute.xlu0 %2435 }
0x14f6   :  { %v2438_v55 = vadd.f32 %v2436_v54, %v6036_v33 }
0x14f8   :  { %5661 = vtanh.f32 %v2438_v55 }
0x14f9   :  { %5663 = vpow2.f32 %v4406_v59 }
0x1502   :  { %v5662_v56 = vpop.eup %5661 }
0x1503   :  { %2442 = vrot.lane.b32.xlu0 %v5662_v56, %s5881_s5  ;;  %v5664_v60 = vpop.eup %5663 }
0x1504   :  { %v2430_v61 = vadd.f32 1.0, %v5664_v60 }
0x1506   :  { %5665 = vrcp.f32 %v2430_v61 }
0x1510   :  { %v5666_v38 = vpop.eup %5665 }
0x1511   :  { %v2440_v62 = vsub.f32 1.0, %v5666_v38  ;;  %v2446_v2 = vmul.f32 %v5666_v38, %v2197_v39 }
0x1575   :  { %v2443_v63 = vpop.permute.xlu0 %2442 }
0x1576   :  { %v2445_v3 = vmul.f32 %v2443_v63, %v2440_v62 }
0x1578   :  { %v2447_v4 = vadd.f32 %v2446_v2, %v2445_v3 }
0x157a   :  { %2449 = vrot.lane.b32.xlu1 %v2447_v4, %s5881_s5 }
0x15ec   :  { %v2450_v5 = vpop.permute.xlu1 %2449 }
0x15ed   :  { %2452 = vst.msk [vmem:[#allocation2 + $0x10] sm:$0x3] %vm451_vm2, %v2450_v5  ;;  %5012 = vmatmul.mubr.msk.f32.vlgmr.msra.gmra.mrb[28].mxu0 %vm166_vm3, %v2450_v5  ;;  %5023 = vmatmul.mubr.msk.f32.vlgmr.msra.gmra.mrb[28].mxu1 %vm166_vm3, %v2450_v5 }
0x15ee   :  { %5424 = vmatpush3.bf16.msra.mxu0 %v6005_v19  ;;  %5033 = vmatprep.mubr.msk.f32.mxu0 %vm5880_vm0, %v5879_v1 }
0x15ef   :  { %5425 = vmatprep.subr.bf16.mxu0 %v5878_v0  ;;  %5430 = vmatpush3.bf16.msra.mxu1 %v5985_v6 }
0x15f0   :  { %5431 = vmatprep.subr.bf16.mxu1 %v5878_v0  ;;  %5044 = vmatprep.mubr.msk.f32.mxu1 %vm5880_vm0, %v5879_v1 }
0x15f2   :  { %5427 = vmatpush3.bf16.msra.mxu0 %v6013_v27 }
0x15f3   :  { %5434 = vmatprep.subr.bf16.mxu0 %v5878_v0  ;;  %5433 = vmatpush3.bf16.msra.mxu1 %v5989_v11 }
0x15f4   :  { %5440 = vmatprep.subr.bf16.mxu1 %v5878_v0 }
0x15f5   :  { %5034 = vmatmul.mubr.msk.f32.vlgmr.msra.gmra.mrb[30].mxu0 %vm166_vm3, %v2450_v5 }
0x15f6   :  { %5436 = vmatpush3.bf16.msra.mxu0 %v6003_v18  ;;  %5055 = vmatprep.mubr.msk.f32.mxu0 %vm5880_vm0, %v5879_v1 }
0x15f7   :  { %5437 = vmatprep.subr.bf16.mxu0 %v5878_v0 }
0x15fa   :  { %5439 = vmatpush3.bf16.msra.mxu0 %v6011_v26 }
0x15fb   :  { %5446 = vmatprep.subr.bf16.mxu0 %v5878_v0 }
0x16c0   :  { %v2521_v7 = vpop.f32.mrb[28].mxu0  ;;  %v2591_v8 = vpop.f32.mrb[28].mxu1 }
0x16c1   :  { %v2665_v9 = vadd.f32 %v2521_v7, %v6036_v33  ;;  %v5013_v10 = vpop.f32.mrb[29].mxu0  ;;  %2673 = vrot.lane.b32.xlu1 %v2591_v8, %s5883_s3  ;;  %v5024_v12 = vpop.f32.mrb[29].mxu1 }
0x16c3   :  { %v4410_v13 = vmul.f32 -1.442695, %v2665_v9 }
0x16c5   :  { %5667 = vpow2.f32 %v4410_v13 }
0x16c8   :  { %v2661_v14 = vpop.f32.mrb[30].mxu0 }
0x16c9   :  { %v5035_v15 = vpop.f32.mrb[31].mxu0  ;;  %v2662_v21 = vadd.f32 %v6318_v20, %v2661_v14 }
0x16cf   :  { %v5668_v16 = vpop.eup %5667 }
0x16d0   :  { %v2669_v17 = vadd.f32 1.0, %v5668_v16 }
0x16d2   :  { %5669 = vrcp.f32 %v2669_v17 }
0x16dc   :  { %v5670_v22 = vpop.eup %5669 }
0x16dd   :  { %v2683_v23 = vmul.f32 %v5670_v22, %v2662_v21 }
0x16df   :  { %2685 = vrot.lane.b32.xlu0 %v2683_v23, %s5882_s24 }
0x1733   :  { %v2674_v29 = vpop.permute.xlu1 %2673 }
0x1734   :  { %v2676_v30 = vadd.f32 %v2674_v29, %v6036_v33 }
0x1736   :  { %v4411_v31 = vmul.f32 -1.442695, %v2676_v30 }
0x1751   :  { %v2686_v24 = vpop.permute.xlu0 %2685 }
0x1752   :  { %v2688_v25 = vadd.f32 %v2686_v24, %v6036_v33 }
0x1754   :  { %5671 = vtanh.f32 %v2688_v25 }
0x1755   :  { %5673 = vpow2.f32 %v4411_v31 }
0x175e   :  { %v5672_v28 = vpop.eup %5671 }
0x175f   :  { %2692 = vrot.lane.b32.xlu0 %v5672_v28, %s5881_s5  ;;  %v5674_v32 = vpop.eup %5673 }
0x1760   :  { %v2680_v34 = vadd.f32 1.0, %v5674_v32 }
0x1762   :  { %5675 = vrcp.f32 %v2680_v34 }
0x176c   :  { %v5676_v35 = vpop.eup %5675 }
0x176d   :  { %v2690_v36 = vsub.f32 1.0, %v5676_v35  ;;  %v2696_v40 = vmul.f32 %v5676_v35, %v2447_v4 }
0x17d1   :  { %v2693_v37 = vpop.permute.xlu0 %2692 }
0x17d2   :  { %v2695_v39 = vmul.f32 %v2693_v37, %v2690_v36 }
0x17d4   :  { %v2697_v41 = vadd.f32 %v2696_v40, %v2695_v39 }
0x17d6   :  { %2699 = vrot.lane.b32.xlu1 %v2697_v41, %s5881_s5 }
0x1848   :  { %v2700_v42 = vpop.permute.xlu1 %2699 }
0x1849   :  { %2702 = vst.msk [vmem:[#allocation2 + $0x12] sm:$0x3] %vm451_vm2, %v2700_v42  ;;  %5045 = vmatmul.mubr.msk.f32.vlgmr.msra.gmra.mrb[30].mxu1 %vm166_vm3, %v2700_v42  ;;  %5056 = vmatmul.mubr.msk.f32.vlgmr.msra.gmra.mrb[32].mxu0 %vm166_vm3, %v2700_v42 }
0x184a   :  { %5442 = vmatpush3.bf16.msra.mxu1 %v6005_v19  ;;  %5066 = vmatprep.mubr.msk.f32.mxu1 %vm5880_vm0, %v5879_v1 }
0x184b   :  { %5443 = vmatprep.subr.bf16.mxu1 %v5878_v0  ;;  %5448 = vmatpush3.bf16.msra.mxu0 %v5985_v6 }
0x184c   :  { %5449 = vmatprep.subr.bf16.mxu0 %v5878_v0  ;;  %5077 = vmatprep.mubr.msk.f32.mxu0 %vm5880_vm0, %v5879_v1 }
0x184e   :  { %5445 = vmatpush3.bf16.msra.mxu1 %v6013_v27 }
0x184f   :  { %5452 = vmatprep.subr.bf16.mxu1 %v5878_v0  ;;  %5451 = vmatpush3.bf16.msra.mxu0 %v5989_v11 }
0x1850   :  { %5458 = vmatprep.subr.bf16.mxu0 %v5878_v0 }
0x1851   :  { %5067 = vmatmul.mubr.msk.f32.vlgmr.msra.gmra.mrb[32].mxu1 %vm166_vm3, %v2700_v42 }
0x1852   :  { %5454 = vmatpush3.bf16.msra.mxu1 %v6003_v18  ;;  %5088 = vmatprep.mubr.msk.f32.mxu1 %vm5880_vm0, %v5879_v1 }
0x1853   :  { %5455 = vmatprep.subr.bf16.mxu1 %v5878_v0 }
0x1856   :  { %5457 = vmatpush3.bf16.msra.mxu1 %v6011_v26 }
0x1857   :  { %5464 = vmatprep.subr.bf16.mxu1 %v5878_v0 }
0x191c   :  { %v2771_v43 = vpop.f32.mrb[30].mxu1  ;;  %v2841_v44 = vpop.f32.mrb[32].mxu0 }
0x191d   :  { %v2915_v45 = vadd.f32 %v2771_v43, %v6036_v33  ;;  %2923 = vrot.lane.b32.xlu1 %v2841_v44, %s5883_s3  ;;  %v5046_v46 = vpop.f32.mrb[31].mxu1  ;;  %v5057_v47 = vpop.f32.mrb[33].mxu0 }
0x191f   :  { %v4415_v48 = vmul.f32 -1.442695, %v2915_v45 }
0x1921   :  { %5677 = vpow2.f32 %v4415_v48 }
0x1924   :  { %v2911_v49 = vpop.f32.mrb[32].mxu1 }
0x1925   :  { %v5068_v50 = vpop.f32.mrb[33].mxu1  ;;  %v2912_v53 = vadd.f32 %v6318_v20, %v2911_v49 }
0x192b   :  { %v5678_v51 = vpop.eup %5677 }
0x192c   :  { %v2919_v52 = vadd.f32 1.0, %v5678_v51 }
0x192e   :  { %5679 = vrcp.f32 %v2919_v52 }
0x1938   :  { %v5680_v54 = vpop.eup %5679 }
0x1939   :  { %v2933_v55 = vmul.f32 %v5680_v54, %v2912_v53 }
0x193b   :  { %2935 = vrot.lane.b32.xlu0 %v2933_v55, %s5882_s24 }
0x198f   :  { %v2924_v59 = vpop.permute.xlu1 %2923 }
0x1990   :  { %v2926_v60 = vadd.f32 %v2924_v59, %v6036_v33 }
0x1992   :  { %v4416_v61 = vmul.f32 -1.442695, %v2926_v60 }
0x19ad   :  { %v2936_v56 = vpop.permute.xlu0 %2935 }
0x19ae   :  { %v2938_v57 = vadd.f32 %v2936_v56, %v6036_v33 }
0x19b0   :  { %5681 = vtanh.f32 %v2938_v57 }
0x19b1   :  { %5683 = vpow2.f32 %v4416_v61 }
0x19ba   :  { %v5682_v58 = vpop.eup %5681 }
0x19bb   :  { %2942 = vrot.lane.b32.xlu0 %v5682_v58, %s5881_s5  ;;  %v5684_v38 = vpop.eup %5683 }
0x19bc   :  { %v2930_v62 = vadd.f32 1.0, %v5684_v38 }
0x19be   :  { %5685 = vrcp.f32 %v2930_v62 }
0x19c8   :  { %v5686_v63 = vpop.eup %5685 }
0x19c9   :  { %v2940_v2 = vsub.f32 1.0, %v5686_v63  ;;  %v2946_v4 = vmul.f32 %v5686_v63, %v2697_v41 }
0x1a2d   :  { %v2943_v3 = vpop.permute.xlu0 %2942 }
0x1a2e   :  { %v2945_v5 = vmul.f32 %v2943_v3, %v2940_v2 }
0x1a30   :  { %v2947_v7 = vadd.f32 %v2946_v4, %v2945_v5 }
0x1a32   :  { %2949 = vrot.lane.b32.xlu1 %v2947_v7, %s5881_s5 }
0x1aa4   :  { %v2950_v8 = vpop.permute.xlu1 %2949 }
0x1aa5   :  { %2952 = vst.msk [vmem:[#allocation2 + $0x14] sm:$0x3] %vm451_vm2, %v2950_v8  ;;  %5078 = vmatmul.mubr.msk.f32.vlgmr.msra.gmra.mrb[34].mxu0 %vm166_vm3, %v2950_v8  ;;  %5089 = vmatmul.mubr.msk.f32.vlgmr.msra.gmra.mrb[34].mxu1 %vm166_vm3, %v2950_v8 }
0x1aa6   :  { %5460 = vmatpush3.bf16.msra.mxu0 %v6005_v19  ;;  %5099 = vmatprep.mubr.msk.f32.mxu0 %vm5880_vm0, %v5879_v1 }
0x1aa7   :  { %5461 = vmatprep.subr.bf16.mxu0 %v5878_v0  ;;  %5466 = vmatpush3.bf16.msra.mxu1 %v5985_v6 }
0x1aa8   :  { %5467 = vmatprep.subr.bf16.mxu1 %v5878_v0  ;;  %5110 = vmatprep.mubr.msk.f32.mxu1 %vm5880_vm0, %v5879_v1 }
0x1aaa   :  { %5463 = vmatpush3.bf16.msra.mxu0 %v6013_v27 }
0x1aab   :  { %5470 = vmatprep.subr.bf16.mxu0 %v5878_v0  ;;  %5469 = vmatpush3.bf16.msra.mxu1 %v5989_v11 }
0x1aac   :  { %5476 = vmatprep.subr.bf16.mxu1 %v5878_v0 }
0x1aad   :  { %5100 = vmatmul.mubr.msk.f32.vlgmr.msra.gmra.mrb[36].mxu0 %vm166_vm3, %v2950_v8 }
0x1aae   :  { %5472 = vmatpush3.bf16.msra.mxu0 %v6003_v18  ;;  %5121 = vmatprep.mubr.msk.f32.mxu0 %vm5880_vm0, %v5879_v1 }
0x1aaf   :  { %5473 = vmatprep.subr.bf16.mxu0 %v5878_v0 }
0x1ab2   :  { %5475 = vmatpush3.bf16.msra.mxu0 %v6011_v26 }
0x1ab3   :  { %5482 = vmatprep.subr.bf16.mxu0 %v5878_v0 }
0x1b78   :  { %v3021_v9 = vpop.f32.mrb[34].mxu0  ;;  %v3091_v10 = vpop.f32.mrb[34].mxu1 }
0x1b79   :  { %v3165_v12 = vadd.f32 %v3021_v9, %v6036_v33  ;;  %v5079_v13 = vpop.f32.mrb[35].mxu0  ;;  %3173 = vrot.lane.b32.xlu1 %v3091_v10, %s5883_s3  ;;  %v5090_v14 = vpop.f32.mrb[35].mxu1 }
0x1b7b   :  { %v4420_v15 = vmul.f32 -1.442695, %v3165_v12 }
0x1b7d   :  { %5687 = vpow2.f32 %v4420_v15 }
0x1b80   :  { %v3161_v16 = vpop.f32.mrb[36].mxu0 }
0x1b81   :  { %v5101_v17 = vpop.f32.mrb[37].mxu0  ;;  %v3162_v23 = vadd.f32 %v6318_v20, %v3161_v16 }
0x1b87   :  { %v5688_v21 = vpop.eup %5687 }
0x1b88   :  { %v3169_v22 = vadd.f32 1.0, %v5688_v21 }
0x1b8a   :  { %5689 = vrcp.f32 %v3169_v22 }
0x1b94   :  { %v5690_v24 = vpop.eup %5689 }
0x1b95   :  { %v3183_v25 = vmul.f32 %v5690_v24, %v3162_v23 }
0x1b97   :  { %3185 = vrot.lane.b32.xlu0 %v3183_v25, %s5882_s24 }
0x1beb   :  { %v3174_v31 = vpop.permute.xlu1 %3173 }
0x1bec   :  { %v3176_v32 = vadd.f32 %v3174_v31, %v6036_v33 }
0x1bee   :  { %v4421_v34 = vmul.f32 -1.442695, %v3176_v32 }
0x1c09   :  { %v3186_v28 = vpop.permute.xlu0 %3185 }
0x1c0a   :  { %v3188_v29 = vadd.f32 %v3186_v28, %v6036_v33 }
0x1c0c   :  { %5691 = vtanh.f32 %v3188_v29 }
0x1c0d   :  { %5693 = vpow2.f32 %v4421_v34 }
0x1c16   :  { %v5692_v30 = vpop.eup %5691 }
0x1c17   :  { %3192 = vrot.lane.b32.xlu0 %v5692_v30, %s5881_s5  ;;  %v5694_v35 = vpop.eup %5693 }
0x1c18   :  { %v3180_v36 = vadd.f32 1.0, %v5694_v35 }
0x1c1a   :  { %5695 = vrcp.f32 %v3180_v36 }
0x1c24   :  { %v5696_v37 = vpop.eup %5695 }
0x1c25   :  { %v3190_v39 = vsub.f32 1.0, %v5696_v37  ;;  %v3196_v42 = vmul.f32 %v5696_v37, %v2947_v7 }
0x1c89   :  { %v3193_v40 = vpop.permute.xlu0 %3192 }
0x1c8a   :  { %v3195_v41 = vmul.f32 %v3193_v40, %v3190_v39 }
0x1c8c   :  { %v3197_v43 = vadd.f32 %v3196_v42, %v3195_v41 }
0x1c8e   :  { %3199 = vrot.lane.b32.xlu1 %v3197_v43, %s5881_s5 }
0x1d00   :  { %v3200_v44 = vpop.permute.xlu1 %3199 }
0x1d01   :  { %3202 = vst.msk [vmem:[#allocation2 + $0x16] sm:$0x3] %vm451_vm2, %v3200_v44  ;;  %5111 = vmatmul.mubr.msk.f32.vlgmr.msra.gmra.mrb[36].mxu1 %vm166_vm3, %v3200_v44  ;;  %5122 = vmatmul.mubr.msk.f32.vlgmr.msra.gmra.mrb[38].mxu0 %vm166_vm3, %v3200_v44 }
0x1d02   :  { %5478 = vmatpush3.bf16.msra.mxu1 %v6005_v19  ;;  %5132 = vmatprep.mubr.msk.f32.mxu1 %vm5880_vm0, %v5879_v1 }
0x1d03   :  { %5479 = vmatprep.subr.bf16.mxu1 %v5878_v0  ;;  %5484 = vmatpush3.bf16.msra.mxu0 %v5985_v6 }
0x1d04   :  { %5485 = vmatprep.subr.bf16.mxu0 %v5878_v0  ;;  %5143 = vmatprep.mubr.msk.f32.mxu0 %vm5880_vm0, %v5879_v1 }
0x1d06   :  { %5481 = vmatpush3.bf16.msra.mxu1 %v6013_v27 }
0x1d07   :  { %5488 = vmatprep.subr.bf16.mxu1 %v5878_v0  ;;  %5487 = vmatpush3.bf16.msra.mxu0 %v5989_v11 }
0x1d08   :  { %5494 = vmatprep.subr.bf16.mxu0 %v5878_v0 }
0x1d09   :  { %5133 = vmatmul.mubr.msk.f32.vlgmr.msra.gmra.mrb[38].mxu1 %vm166_vm3, %v3200_v44 }
0x1d0a   :  { %5490 = vmatpush3.bf16.msra.mxu1 %v6003_v18  ;;  %5154 = vmatprep.mubr.msk.f32.mxu1 %vm5880_vm0, %v5879_v1 }
0x1d0b   :  { %5491 = vmatprep.subr.bf16.mxu1 %v5878_v0 }
0x1d0e   :  { %5493 = vmatpush3.bf16.msra.mxu1 %v6011_v26 }
0x1d0f   :  { %5500 = vmatprep.subr.bf16.mxu1 %v5878_v0 }
0x1dd4   :  { %v3271_v45 = vpop.f32.mrb[36].mxu1  ;;  %v3341_v46 = vpop.f32.mrb[38].mxu0 }
0x1dd5   :  { %v3415_v47 = vadd.f32 %v3271_v45, %v6036_v33  ;;  %3423 = vrot.lane.b32.xlu1 %v3341_v46, %s5883_s3  ;;  %v5112_v48 = vpop.f32.mrb[37].mxu1  ;;  %v5123_v49 = vpop.f32.mrb[39].mxu0 }
0x1dd7   :  { %v4425_v50 = vmul.f32 -1.442695, %v3415_v47 }
0x1dd9   :  { %5697 = vpow2.f32 %v4425_v50 }
0x1ddc   :  { %v3411_v51 = vpop.f32.mrb[38].mxu1 }
0x1ddd   :  { %v5134_v52 = vpop.f32.mrb[39].mxu1  ;;  %v3412_v55 = vadd.f32 %v6318_v20, %v3411_v51 }
0x1de3   :  { %v5698_v53 = vpop.eup %5697 }
0x1de4   :  { %v3419_v54 = vadd.f32 1.0, %v5698_v53 }
0x1de6   :  { %5699 = vrcp.f32 %v3419_v54 }
0x1df0   :  { %v5700_v56 = vpop.eup %5699 }
0x1df1   :  { %v3433_v57 = vmul.f32 %v5700_v56, %v3412_v55 }
0x1df3   :  { %3435 = vrot.lane.b32.xlu0 %v3433_v57, %s5882_s24 }
0x1e47   :  { %v3424_v61 = vpop.permute.xlu1 %3423 }
0x1e48   :  { %v3426_v38 = vadd.f32 %v3424_v61, %v6036_v33 }
0x1e4a   :  { %v4426_v62 = vmul.f32 -1.442695, %v3426_v38 }
0x1e65   :  { %v3436_v58 = vpop.permute.xlu0 %3435 }
0x1e66   :  { %v3438_v59 = vadd.f32 %v3436_v58, %v6036_v33  ;;  %v4207_v58 = vld [vmem:[#allocation9] sm:$0xff] }
0x1e68   :  { %5701 = vtanh.f32 %v3438_v59  ;;  %v4208_v59 = vld [vmem:[#allocation9 + $0x8] sm:$0xff] }
0x1e69   :  { %5703 = vpow2.f32 %v4426_v62 }
0x1e72   :  { %v5702_v60 = vpop.eup %5701 }
0x1e73   :  { %3442 = vrot.lane.b32.xlu0 %v5702_v60, %s5881_s5  ;;  %v5704_v63 = vpop.eup %5703  ;;  %v5536_v60 = vpack.c.bf16 %v4208_v59, %v4207_v58 }
0x1e74   :  { %v3430_v2 = vadd.f32 1.0, %v5704_v63 }
0x1e76   :  { %5705 = vrcp.f32 %v3430_v2 }
0x1e80   :  { %v5706_v3 = vpop.eup %5705 }
0x1e81   :  { %v3440_v4 = vsub.f32 1.0, %v5706_v3  ;;  %v3446_v7 = vmul.f32 %v5706_v3, %v3197_v43 }
0x1ee5   :  { %v3443_v5 = vpop.permute.xlu0 %3442 }
0x1ee6   :  { %v3445_v8 = vmul.f32 %v3443_v5, %v3440_v4 }
0x1ee8   :  { %v3447_v9 = vadd.f32 %v3446_v7, %v3445_v8 }
0x1eea   :  { %3449 = vrot.lane.b32.xlu1 %v3447_v9, %s5881_s5 }
0x1f5c   :  { %v3450_v10 = vpop.permute.xlu1 %3449 }
0x1f5d   :  { %3452 = vst.msk [vmem:[#allocation2 + $0x18] sm:$0x3] %vm451_vm2, %v3450_v10  ;;  %5144 = vmatmul.mubr.msk.f32.vlgmr.msra.gmra.mrb[40].mxu0 %vm166_vm3, %v3450_v10  ;;  %5155 = vmatmul.mubr.msk.f32.vlgmr.msra.gmra.mrb[40].mxu1 %vm166_vm3, %v3450_v10 }
0x1f5e   :  { %5496 = vmatpush3.bf16.msra.mxu0 %v6005_v19  ;;  %5165 = vmatprep.mubr.msk.f32.mxu0 %vm5880_vm0, %v5879_v1 }
0x1f5f   :  { %5497 = vmatprep.subr.bf16.mxu0 %v5878_v0  ;;  %5502 = vmatpush3.bf16.msra.mxu1 %v5985_v6 }
0x1f60   :  { %5503 = vmatprep.subr.bf16.mxu1 %v5878_v0  ;;  %5176 = vmatprep.mubr.msk.f32.mxu1 %vm5880_vm0, %v5879_v1 }
0x1f62   :  { %5499 = vmatpush3.bf16.msra.mxu0 %v6013_v27 }
0x1f63   :  { %5506 = vmatprep.subr.bf16.mxu0 %v5878_v0  ;;  %5505 = vmatpush3.bf16.msra.mxu1 %v5989_v11 }
0x1f64   :  { %5512 = vmatprep.subr.bf16.mxu1 %v5878_v0 }
0x1f65   :  { %5166 = vmatmul.mubr.msk.f32.vlgmr.msra.gmra.mrb[42].mxu0 %vm166_vm3, %v3450_v10 }
0x1f66   :  { %5508 = vmatpush3.bf16.msra.mxu0 %v6003_v18  ;;  %5187 = vmatprep.mubr.msk.f32.mxu0 %vm5880_vm0, %v5879_v1 }
0x1f67   :  { %5509 = vmatprep.subr.bf16.mxu0 %v5878_v0 }
0x1f6a   :  { %5511 = vmatpush3.bf16.msra.mxu0 %v6011_v26 }
0x1f6b   :  { %5518 = vmatprep.subr.bf16.mxu0 %v5878_v0 }
0x2030   :  { %v3521_v12 = vpop.f32.mrb[40].mxu0  ;;  %v3591_v13 = vpop.f32.mrb[40].mxu1 }
0x2031   :  { %v3665_v14 = vadd.f32 %v3521_v12, %v6036_v33  ;;  %v5145_v15 = vpop.f32.mrb[41].mxu0  ;;  %3673 = vrot.lane.b32.xlu1 %v3591_v13, %s5883_s3  ;;  %v5156_v16 = vpop.f32.mrb[41].mxu1  ;;  %v4209_v12 = vld [vmem:[#allocation9 + $0x10] sm:$0xff]  ;;  %v4210_v13 = vld [vmem:[#allocation9 + $0x18] sm:$0xff] }
0x2032   :  { %v5540_v15 = vpack.c.bf16 %v4210_v13, %v4209_v12  ;;  %v4203_v16 = vld [vmem:[#allocation2] sm:$0xff] }
0x2033   :  { %v4430_v17 = vmul.f32 -1.442695, %v3665_v14 }
0x2035   :  { %5707 = vpow2.f32 %v4430_v17  ;;  %v4204_v17 = vld [vmem:[#allocation2 + $0x8] sm:$0xff] }
0x2038   :  { %v3661_v21 = vpop.f32.mrb[42].mxu0 }
0x2039   :  { %v5167_v22 = vpop.f32.mrb[43].mxu0  ;;  %v3662_v25 = vadd.f32 %v6318_v20, %v3661_v21  ;;  %v4205_v21 = vld [vmem:[#allocation2 + $0x10] sm:$0xff] }
0x203f   :  { %v5708_v23 = vpop.eup %5707 }
0x2040   :  { %v3669_v24 = vadd.f32 1.0, %v5708_v23 }
0x2042   :  { %5709 = vrcp.f32 %v3669_v24 }
0x204c   :  { %v5710_v28 = vpop.eup %5709 }
0x204d   :  { %v3683_v29 = vmul.f32 %v5710_v28, %v3662_v25 }
0x204f   :  { %3685 = vrot.lane.b32.xlu0 %v3683_v29, %s5882_s24 }
0x20a3   :  { %v3674_v34 = vpop.permute.xlu1 %3673 }
0x20a4   :  { %v3676_v35 = vadd.f32 %v3674_v34, %v6036_v33 }
0x20a6   :  { %v4431_v36 = vmul.f32 -1.442695, %v3676_v35 }
0x20c1   :  { %v3686_v30 = vpop.permute.xlu0 %3685 }
0x20c2   :  { %v3688_v31 = vadd.f32 %v3686_v30, %v6036_v33 }
0x20c4   :  { %5711 = vtanh.f32 %v3688_v31 }
0x20c5   :  { %5713 = vpow2.f32 %v4431_v36 }
0x20ce   :  { %v5712_v32 = vpop.eup %5711 }
0x20cf   :  { %3692 = vrot.lane.b32.xlu0 %v5712_v32, %s5881_s5  ;;  %v5714_v37 = vpop.eup %5713 }
0x20d0   :  { %v3680_v39 = vadd.f32 1.0, %v5714_v37 }
0x20d2   :  { %5715 = vrcp.f32 %v3680_v39 }
0x20dc   :  { %v5716_v40 = vpop.eup %5715 }
0x20dd   :  { %v3690_v41 = vsub.f32 1.0, %v5716_v40  ;;  %v3696_v44 = vmul.f32 %v5716_v40, %v3447_v9 }
0x2141   :  { %v3693_v42 = vpop.permute.xlu0 %3692 }
0x2142   :  { %v3695_v43 = vmul.f32 %v3693_v42, %v3690_v41 }
0x2144   :  { %v3697_v45 = vadd.f32 %v3696_v44, %v3695_v43 }
0x2146   :  { %3699 = vrot.lane.b32.xlu1 %v3697_v45, %s5881_s5 }
0x21b8   :  { %v3700_v46 = vpop.permute.xlu1 %3699 }
0x21b9   :  { %3702 = vst.msk [vmem:[#allocation2 + $0x1a] sm:$0x3] %vm451_vm2, %v3700_v46  ;;  %5177 = vmatmul.mubr.msk.f32.vlgmr.msra.gmra.mrb[42].mxu1 %vm166_vm3, %v3700_v46  ;;  %5188 = vmatmul.mubr.msk.f32.vlgmr.msra.gmra.mrb[44].mxu0 %vm166_vm3, %v3700_v46 }
0x21ba   :  { %5514 = vmatpush3.bf16.msra.mxu1 %v6005_v19  ;;  %5198 = vmatprep.mubr.msk.f32.mxu1 %vm5880_vm0, %v5879_v1 }
0x21bb   :  { %5515 = vmatprep.subr.bf16.mxu1 %v5878_v0  ;;  %5520 = vmatpush3.bf16.msra.mxu0 %v5985_v6 }
0x21bc   :  { %5521 = vmatprep.subr.bf16.mxu0 %v5878_v0  ;;  %5209 = vmatprep.mubr.msk.f32.mxu0 %vm5880_vm0, %v5879_v1 }
0x21be   :  { %5517 = vmatpush3.bf16.msra.mxu1 %v6013_v27 }
0x21bf   :  { %5524 = vmatprep.subr.bf16.mxu1 %v5878_v0  ;;  %5523 = vmatpush3.bf16.msra.mxu0 %v5989_v11 }
0x21c0   :  { %5530 = vmatprep.subr.bf16.mxu0 %v5878_v0 }
0x21c1   :  { %5199 = vmatmul.mubr.msk.f32.vlgmr.msra.gmra.mrb[44].mxu1 %vm166_vm3, %v3700_v46 }
0x21c2   :  { %5526 = vmatpush3.bf16.msra.mxu1 %v6003_v18  ;;  %5220 = vmatprep.mubr.msk.f32.mxu1 %vm5880_vm0, %v5879_v1 }
0x21c3   :  { %5527 = vmatprep.subr.bf16.mxu1 %v5878_v0 }
0x21c6   :  { %5529 = vmatpush3.bf16.msra.mxu1 %v6011_v26 }
0x21c7   :  { %5537 = vmatprep.subr.bf16.mxu1 %v5536_v60 }
0x228c   :  { %v3771_v6 = vpop.f32.mrb[42].mxu1  ;;  %v3841_v47 = vpop.f32.mrb[44].mxu0 }
0x228d   :  { %v3915_v48 = vadd.f32 %v3771_v6, %v6036_v33  ;;  %3923 = vrot.lane.b32.xlu1 %v3841_v47, %s5883_s3  ;;  %v5178_v11 = vpop.f32.mrb[43].mxu1  ;;  %v5189_v49 = vpop.f32.mrb[45].mxu0 }
0x228f   :  { %v4435_v50 = vmul.f32 -1.442695, %v3915_v48 }
0x2291   :  { %5717 = vpow2.f32 %v4435_v50 }
0x2294   :  { %v3911_v51 = vpop.f32.mrb[44].mxu1 }
0x2295   :  { %v5200_v52 = vpop.f32.mrb[45].mxu1  ;;  %v3912_v54 = vadd.f32 %v6318_v20, %v3911_v51 }
0x229b   :  { %v5718_v18 = vpop.eup %5717 }
0x229c   :  { %v3919_v53 = vadd.f32 1.0, %v5718_v18 }
0x229e   :  { %5719 = vrcp.f32 %v3919_v53 }
0x22a8   :  { %v5720_v55 = vpop.eup %5719 }
0x22a9   :  { %v3933_v56 = vmul.f32 %v5720_v55, %v3912_v54 }
0x22ab   :  { %3935 = vrot.lane.b32.xlu0 %v3933_v56, %s5882_s24 }
0x22ff   :  { %v3924_v38 = vpop.permute.xlu1 %3923 }
0x2300   :  { %v3926_v62 = vadd.f32 %v3924_v38, %v6036_v33 }
0x2302   :  { %v4436_v63 = vmul.f32 -1.442695, %v3926_v62 }
0x231d   :  { %v3936_v26 = vpop.permute.xlu0 %3935 }
0x231e   :  { %v3938_v57 = vadd.f32 %v3936_v26, %v6036_v33 }
0x2320   :  { %5721 = vtanh.f32 %v3938_v57 }
0x2321   :  { %5723 = vpow2.f32 %v4436_v63 }
0x232a   :  { %v5722_v61 = vpop.eup %5721 }
0x232b   :  { %3942 = vrot.lane.b32.xlu0 %v5722_v61, %s5881_s5  ;;  %v5724_v2 = vpop.eup %5723 }
0x232c   :  { %v3930_v3 = vadd.f32 1.0, %v5724_v2 }
0x232e   :  { %5725 = vrcp.f32 %v3930_v3 }
0x2338   :  { %v5726_v4 = vpop.eup %5725 }
0x2339   :  { %v3940_v5 = vsub.f32 1.0, %v5726_v4  ;;  %v3946_v8 = vmul.f32 %v5726_v4, %v3697_v45 }
0x239d   :  { %v3943_v7 = vpop.permute.xlu0 %3942 }
0x239e   :  { %v3945_v9 = vmul.f32 %v3943_v7, %v3940_v5 }
0x23a0   :  { %v6474_v10 = vadd.f32 %v3946_v8, %v3945_v9 }
0x23a2   :  { %3949 = vrot.lane.b32.xlu1 %v6474_v10, %s5881_s5 }
0x2414   :  { %v3950_v14 = vpop.permute.xlu1 %3949 }
0x2415   :  { %3952 = vst.msk [vmem:[#allocation2 + $0x1c] sm:$0x3] %vm451_vm2, %v3950_v14  ;;  %5210 = vmatmul.mubr.msk.f32.vlgmr.msra.gmra.mrb[46].mxu0 %vm166_vm3, %v3950_v14  ;;  %5221 = vmatmul.mubr.msk.f32.vlgmr.msra.gmra.mrb[46].mxu1 %vm166_vm3, %v3950_v14 }
0x2416   :  { %5532 = vmatpush3.bf16.msra.mxu0 %v6005_v19  ;;  %5539 = vmatpush3.bf16.msra.mxu1 %v5536_v60 }
0x2417   :  { %5242 = vmatprep.mubr.msk.f32.mxu1 %vm166_vm3, %v4203_v16  ;;  %5533 = vmatprep.subr.bf16.mxu0 %v5878_v0 }
0x2418   :  { %5541 = vmatprep.subr.bf16.mxu1 %v5540_v15  ;;  %5231 = vmatprep.mubr.msk.f32.mxu0 %vm5880_vm0, %v5879_v1 }
0x241a   :  { %5535 = vmatpush3.bf16.msra.mxu0 %v6013_v27  ;;  %5543 = vmatpush3.bf16.msra.mxu1 %v5540_v15  ;;  %v4442_v27 = vld [vmem:[%s6525_s6] ss:$0 sm:$0xff]  ;;  %s5884_s6 = smov [#allocation11]  }
0x241b   :  { %s4348_s10 = sshll.u32 %s5884_s6, 4  ;;  %s4349_s10 = int_to_ptr.vmem [resolvable:$true] %s4348_s10 }
0x241c   :  { %s5842_s11 = scalar_lea.vmem %s4349_s10, 512  ;;  %p5847_p5 = scmp.lt.s32.totalorder %s4349_s10, %s4349_s10 }
0x241d   :  { %5232 = vmatmul.mubr.msk.f32.vlgmr.msra.gmra.mrb[48].mxu0 %vm166_vm3, %v3950_v14  ;;  %5243 = vmatmul.mubr.msk.f32.vlgmr.msra.gmra.mrb[48].mxu1 %vm166_vm3, %v4204_v17  ;;  %p5843_p4 = scmp.ne.s32.totalorder %s4349_s10, %s5842_s11  ;;  %p5848_p6 = scmp.lt.s32.totalorder %s5842_s11, %s5842_s11 }
0x241e   :  { %5245 = vmatprep.mubr.msk.f32.mxu1 %vm166_vm3, %v4205_v21 }
0x241f   :  { %p5849_p7 = por %p5848_p6, %p5847_p5 }
0x2421   :  { %p5850_p8 = pnand %p5849_p7, %p5843_p4 }
0x24e8   :  { %v4021_v19 = vpop.f32.mrb[46].mxu0  ;;  %v4091_v22 = vpop.f32.mrb[46].mxu1 }
0x24e9   :  { %v4165_v23 = vadd.f32 %v4021_v19, %v6036_v33  ;;  %v5211_v0 = vpop.f32.mrb[47].mxu0  ;;  %4173 = vrot.lane.b32.xlu1 %v4091_v22, %s5883_s3  ;;  %v5222_v24 = vpop.f32.mrb[47].mxu1 }
0x24eb   :  { %v4440_v1 = vmul.f32 -1.442695, %v4165_v23 }
0x24ed   :  { %5727 = vpow2.f32 %v4440_v1 }
0x24f0   :  { %v4161_v25 = vpop.f32.mrb[48].mxu0  ;;  %v5244_v28 = vpop.f32.mrb[48].mxu1 }
0x24f1   :  { %v4302_v29 = vadd.f32 %v5244_v28, %v4442_v27  ;;  %v5233_v30 = vpop.f32.mrb[49].mxu0  ;;  %v4296_v31 = vpop.f32.mrb[49].mxu1  ;;  %v4162_v43 = vadd.f32 %v6318_v20, %v4161_v25 }
0x24f2   :  { %v4297_v32 = vadd.f32 %v4442_v27, %v4296_v31 }
0x24f3   :  { %v4448_v34 = vmul.f32 -1.442695, %v4302_v29 }
0x24f4   :  { %v4447_v35 = vmul.f32 -1.442695, %v4297_v32 }
0x24f5   :  { %5729 = vpow2.f32 %v4448_v34 }
0x24f6   :  { %5731 = vpow2.f32 %v4447_v35 }
0x24f7   :  { %v5728_v36 = vpop.eup %5727 }
0x24f8   :  { %v4169_v37 = vadd.f32 1.0, %v5728_v36 }
0x24fa   :  { %5733 = vrcp.f32 %v4169_v37 }
0x24ff   :  { %v5730_v39 = vpop.eup %5729 }
0x2500   :  { %v5732_v40 = vpop.eup %5731  ;;  %v4328_v41 = vadd.f32 1.0, %v5730_v39 }
0x2501   :  { %v4327_v42 = vadd.f32 1.0, %v5732_v40 }
0x2502   :  { %5735 = vrcp.f32 %v4328_v41 }
0x2503   :  { %5737 = vrcp.f32 %v4327_v42 }
0x2504   :  { %v5734_v44 = vpop.eup %5733 }
0x2505   :  { %v4183_v45 = vmul.f32 %v5734_v44, %v4162_v43 }
0x2507   :  { %4185 = vrot.lane.b32.xlu0 %v4183_v45, %s5882_s24 }
0x250c   :  { %v5736_v46 = vpop.eup %5735 }
0x250d   :  { %v5738_v6 = vpop.eup %5737  ;;  %4340 = vst [vmem:[#allocation11 + $0x8] sm:$0xff] %v5736_v46 }
0x250e   :  { %4339 = vst [vmem:[#allocation11] sm:$0xff] %v5738_v6 }
0x255b   :  { %v4174_v49 = vpop.permute.xlu1 %4173 }
0x255c   :  { %v4176_v50 = vadd.f32 %v4174_v49, %v6036_v33 }
0x255e   :  { %v4441_v20 = vmul.f32 -1.442695, %v4176_v50 }
0x2579   :  { %v4186_v47 = vpop.permute.xlu0 %4185 }
0x257a   :  { %v4188_v48 = vadd.f32 %v4186_v47, %v6036_v33 }
0x257c   :  { %5739 = vtanh.f32 %v4188_v48 }
0x257d   :  { %5741 = vpow2.f32 %v4441_v20 }
0x2586   :  { %v5740_v11 = vpop.eup %5739 }
0x2587   :  { %4192 = vrot.lane.b32.xlu0 %v5740_v11, %s5881_s5  ;;  %v5742_v51 = vpop.eup %5741 }
0x2588   :  { %v4180_v52 = vadd.f32 1.0, %v5742_v51 }
0x258a   :  { %5743 = vrcp.f32 %v4180_v52 }
0x2594   :  { %v5744_v18 = vpop.eup %5743 }
0x2595   :  { %v4190_v53 = vsub.f32 1.0, %v5744_v18  ;;  %v4196_v56 = vmul.f32 %v5744_v18, %v6474_v10 }
0x25f9   :  { %v4193_v54 = vpop.permute.xlu0 %4192 }
0x25fa   :  { %v4195_v55 = vmul.f32 %v4193_v54, %v4190_v53 }
0x25fc   :  { %v4197_v26 = vadd.f32 %v4196_v56, %v4195_v55 }
0x25fe   :  { %4199 = vrot.lane.b32.xlu1 %v4197_v26, %s5881_s5 }
0x2670   :  { %v4200_v57 = vpop.permute.xlu1 %4199 }
0x2671   :  { %4202 = vst.msk [vmem:[#allocation2 + $0x1e] sm:$0x3] %vm451_vm2, %v4200_v57 }
0x2678   :  { %v4206_v58 = vld [vmem:[#allocation2 + $0x18] sm:$0xff] }
0x2679   :  { %5246 = vmatmul.mubr.msk.f32.gmra.mrb[50].mxu1 %vm166_vm3, %v4206_v58 }
0x274c   :  { %v5247_v33 = vpop.f32.mrb[50].mxu1 }
0x274d   :  { %v4312_v59 = vadd.f32 %v5247_v33, %v4442_v27  ;;  %v4306_v60 = vpop.f32.mrb[51].mxu1 }
0x274e   :  { %v4307_v61 = vadd.f32 %v4442_v27, %v4306_v60 }
0x274f   :  { %v4450_v38 = vmul.f32 -1.442695, %v4312_v59 }
0x2750   :  { %v4449_v62 = vmul.f32 -1.442695, %v4307_v61 }
0x2751   :  { %5745 = vpow2.f32 %v4450_v38 }
0x2752   :  { %5747 = vpow2.f32 %v4449_v62 }
0x275b   :  { %v5746_v63 = vpop.eup %5745 }
0x275c   :  { %v5748_v2 = vpop.eup %5747  ;;  %v4330_v3 = vadd.f32 1.0, %v5746_v63 }
0x275d   :  { %v4329_v4 = vadd.f32 1.0, %v5748_v2 }
0x275e   :  { %5749 = vrcp.f32 %v4330_v3 }
0x275f   :  { %5751 = vrcp.f32 %v4329_v4 }
0x2768   :  { %v5750_v5 = vpop.eup %5749 }
0x2769   :  { %v5752_v7 = vpop.eup %5751  ;;  %4342 = vst [vmem:[#allocation11 + $0x18] sm:$0xff] %v5750_v5 }
0x276a   :  { %4341 = vst [vmem:[#allocation11 + $0x10] sm:$0xff] %v5752_v7 }
0x276b   :  { %5853 = shalt.err (!%p5850_p8)
}
0x276c   :  { %s5854_s14 = scalar_lea.hbm %s6526_s7, 512 }
0x276d   :  { %p5855_p9 = scmp.ne.s32.totalorder %s6526_s7, %s5854_s14  ;;  %p5858_p10 = scmp.lt.u32.totalorder %s5854_s14, %s6526_s7 }
0x276f   :  { %p5860_p11 = pnand %p5858_p10, %p5855_p9 }
0x2771   :  { %5863 = shalt.err (!%p5860_p11)
}
0x2772   :  { %4354 = dma.vmem_to_hbm [thread:$0]  %s4349_s10, 512, %s6526_s7, [#allocation5], %s5875_s0, %s5875_s0, %s5876_s27  }
0x2773   :  { %5870 = dma.done.wait [#allocation5], 512  }
0x2774   :  { %5871 = vsyncadd [#allocation5], 4294966784 }
0x2775   :  { %4358 = vsyncpa [#allocation4], 1 }
0x2776   :  { %4359 = vsyncpa [#allocation7], 1 }
0x2777   :  { %4360 = vsyncpa [#allocation10], 1 }
0x2778   :  { %4361 = vsyncpa [#allocation5], 1 }

</bundles_post_ra>
